<compile_context>
chip_gen: v6e
topology: v6e:2x2x1
jax: 0.10.0
libtpu: 0.0.40
codegen_flags: <defaults>
</compile_context>

<pallas_src>
import math

import jax
import jax.numpy as jnp
from jax import lax
from jax.experimental import pallas as pl
from jax.experimental.pallas import tpu as pltpu

NEG_SLOPE = 0.01    # F.leaky_relu default negative slope
EPS = 1e-12         # F.normalize default eps
PAD = 128           # lane-dense width for all feature dims
ROW_TILE = 256      # row tile; multiple of 256 fills v6e/v7x MXU rows


def _leaky_relu(x):
    # max(x, s*x) == leaky_relu(x) for 0 < s < 1 (mul+max, no cmp+select).
    return jnp.maximum(x, NEG_SLOPE * x)


def _round_up(n, m):
    return ((n + m - 1) // m) * m


def _pad2d(a, rows, cols):
    r, c = a.shape
    return jnp.pad(a, ((0, rows - r), (0, cols - c)))


def _vmem_limit(block_bytes, resident_bytes):
    # Blocked arrays are double-buffered by the pipeline; add headroom for the
    # f32 intermediates.  Clamp to 56 MiB (safe on v7x's 64 MiB physical VMEM)
    # and never request less than 32 MiB.
    need = 2 * block_bytes + resident_bytes + (4 << 20)
    return int(min(max(need, 32 << 20), 56 << 20))


def _compiler_params(block_bytes, resident_bytes):
    return pltpu.CompilerParams(
        dimension_semantics=("parallel",),
        vmem_limit_bytes=_vmem_limit(block_bytes, resident_bytes))


# ---------------------------------------------------------------------------
# Kernels (all row-tiled over the node dimension)
# ---------------------------------------------------------------------------
def _pre_kernel(feat_ref, id_ref, wmlp_ref, bmlp_ref, wcat_ref, blin_ref,
                xw_ref, xhat_ref):
    # temp = feat @ Wmlp^T + b ; x = temp / max(||temp||, eps)
    t = jnp.dot(feat_ref[...], wmlp_ref[...],
                preferred_element_type=jnp.float32) + bmlp_ref[...]
    ss = jnp.sum(t * t, axis=1, keepdims=True)
    inv = jnp.minimum(lax.rsqrt(ss), 1.0 / EPS)   # == 1 / max(norm, eps)
    x = t * inv
    # Layer-1 row-local work: [x@W_conv | x@W_lin^T] in one 256-wide MXU pass.
    cat = jnp.dot(x.astype(jnp.bfloat16), wcat_ref[...],
                  preferred_element_type=jnp.float32)
    xw_ref[...] = cat[:, :PAD].astype(jnp.bfloat16)
    xhat_ref[...] = _leaky_relu(cat[:, PAD:] + blin_ref[...]) + id_ref[...]


def _layer_mid_kernel(adj_ref, xhat_ref, id_ref, xw_ref, wg_ref, bg_ref,
                      wcat_ref, blin_ref, xw_out_ref, xhat_out_ref):
    a = adj_ref[...].astype(jnp.bfloat16)          # int8 -> bf16 (cheap VPU)
    h = _leaky_relu(jnp.dot(a, xw_ref[...],
                            preferred_element_type=jnp.float32))
    g = jnp.dot(h.astype(jnp.bfloat16), wg_ref[...],
                preferred_element_type=jnp.float32) + bg_ref[...]
    x = _leaky_relu(g + xhat_ref[...])
    # Row-local work for the NEXT layer, fused here (x never hits HBM).
    cat = jnp.dot(x.astype(jnp.bfloat16), wcat_ref[...],
                  preferred_element_type=jnp.float32)
    xw_out_ref[...] = cat[:, :PAD].astype(jnp.bfloat16)
    xhat_out_ref[...] = _leaky_relu(cat[:, PAD:] + blin_ref[...]) + id_ref[...]


def _layer_last_kernel(adj_ref, xhat_ref, xw_ref, wg_ref, bg_ref, out_ref):
    a = adj_ref[...].astype(jnp.bfloat16)
    h = _leaky_relu(jnp.dot(a, xw_ref[...],
                            preferred_element_type=jnp.float32))
    g = jnp.dot(h.astype(jnp.bfloat16), wg_ref[...],
                preferred_element_type=jnp.float32) + bg_ref[...]
    out_ref[...] = _leaky_relu(g + xhat_ref[...])


# ---------------------------------------------------------------------------
# pallas_call wrappers
# ---------------------------------------------------------------------------
def _row_block(tm, cols):
    return pl.BlockSpec((tm, cols), lambda i: (i, 0))


def _resident(rows, cols):
    return pl.BlockSpec((rows, cols), lambda i: (0, 0))


def _adj_spec(tm, n_pad, adj_buffers):
    if adj_buffers == 2:
        return pl.BlockSpec((tm, n_pad), lambda i: (i, 0))
    # Deeper pipelining of the adjacency stream (e.g. 3 on v5e if the trace
    # shows exposed DMA after tiling).
    return pl.BlockSpec((tm, n_pad), lambda i: (i, 0),
                        pipeline_mode=pl.Buffered(adj_buffers))


def _run_pre(feat_p, id_p, wmlp, bmlp, wcat, blin, n_pad, f_pad, tm):
    grid = (n_pad // tm,)
    block_bytes = tm * (f_pad * 2 + PAD * 4 + PAD * 2 + PAD * 4)
    resident_bytes = (wmlp.size * 2 + bmlp.size * 4 +
                      wcat.size * 2 + blin.size * 4)
    flops = 2 * n_pad * f_pad * PAD + 2 * n_pad * PAD * (2 * PAD)
    bytes_accessed = (feat_p.size * 2 + id_p.size * 4 + resident_bytes
                      + n_pad * PAD * (2 + 4))
    return pl.pallas_call(
        _pre_kernel,
        grid=grid,
        in_specs=[_row_block(tm, f_pad), _row_block(tm, PAD),
                  _resident(f_pad, PAD), _resident(1, PAD),
                  _resident(PAD, 2 * PAD), _resident(1, PAD)],
        out_specs=(_row_block(tm, PAD), _row_block(tm, PAD)),
        out_shape=(jax.ShapeDtypeStruct((n_pad, PAD), jnp.bfloat16),
                   jax.ShapeDtypeStruct((n_pad, PAD), jnp.float32)),
        compiler_params=_compiler_params(block_bytes, resident_bytes),
        cost_estimate=pl.CostEstimate(flops=flops, transcendentals=n_pad,
                                      bytes_accessed=bytes_accessed),
    )(feat_p, id_p, wmlp, bmlp, wcat, blin)


def _run_layer_mid(adj_p, xhat, id_p, xw, wg, bg, wcat_next, blin_next,
                   n_pad, tm, adj_buffers):
    grid = (n_pad // tm,)
    a_item = adj_p.dtype.itemsize
    block_bytes = tm * (n_pad * a_item + PAD * 4 + PAD * 4 + PAD * 2 + PAD * 4)
    resident_bytes = (xw.size * 2 + wg.size * 2 + bg.size * 4 +
                      wcat_next.size * 2 + blin_next.size * 4)
    flops = (2 * n_pad * n_pad * PAD + 2 * n_pad * PAD * PAD
             + 2 * n_pad * PAD * (2 * PAD))
    bytes_accessed = (adj_p.size * a_item + xhat.size * 4 + id_p.size * 4
                      + resident_bytes + n_pad * PAD * (2 + 4))
    return pl.pallas_call(
        _layer_mid_kernel,
        grid=grid,
        in_specs=[_adj_spec(tm, n_pad, adj_buffers),
                  _row_block(tm, PAD), _row_block(tm, PAD),
                  _resident(n_pad, PAD),
                  _resident(PAD, PAD), _resident(1, PAD),
                  _resident(PAD, 2 * PAD), _resident(1, PAD)],
        out_specs=(_row_block(tm, PAD), _row_block(tm, PAD)),
        out_shape=(jax.ShapeDtypeStruct((n_pad, PAD), jnp.bfloat16),
                   jax.ShapeDtypeStruct((n_pad, PAD), jnp.float32)),
        compiler_params=_compiler_params(block_bytes, resident_bytes),
        cost_estimate=pl.CostEstimate(flops=flops, transcendentals=0,
                                      bytes_accessed=bytes_accessed),
    )(adj_p, xhat, id_p, xw, wg, bg, wcat_next, blin_next)


def _run_layer_last(adj_p, xhat, xw, wg, bg, n_pad, tm, adj_buffers):
    grid = (n_pad // tm,)
    a_item = adj_p.dtype.itemsize
    block_bytes = tm * (n_pad * a_item + PAD * 4 + PAD * 4)
    resident_bytes = xw.size * 2 + wg.size * 2 + bg.size * 4
    flops = 2 * n_pad * n_pad * PAD + 2 * n_pad * PAD * PAD
    bytes_accessed = (adj_p.size * a_item + xhat.size * 4 + resident_bytes
                      + n_pad * PAD * 4)
    return pl.pallas_call(
        _layer_last_kernel,
        grid=grid,
        in_specs=[_adj_spec(tm, n_pad, adj_buffers),
                  _row_block(tm, PAD),
                  _resident(n_pad, PAD),
                  _resident(PAD, PAD), _resident(1, PAD)],
        out_specs=_row_block(tm, PAD),
        out_shape=jax.ShapeDtypeStruct((n_pad, PAD), jnp.float32),
        compiler_params=_compiler_params(block_bytes, resident_bytes),
        cost_estimate=pl.CostEstimate(flops=flops, transcendentals=0,
                                      bytes_accessed=bytes_accessed),
    )(adj_p, xhat, xw, wg, bg)


# ---------------------------------------------------------------------------
# Parameter / input preparation (padding, casts, [W_conv | W_lin] concat)
# ---------------------------------------------------------------------------
def _prepare_inputs(features, id_embedding, adj, params, num_layers, tm):
    n = features.shape[0]
    n_pad = _round_up(max(n, tm), tm)
    f_pad = _round_up(features.shape[1], PAD)

    feat_p = _pad2d(features, n_pad, f_pad).astype(jnp.bfloat16)
    id_p = _pad2d(id_embedding, n_pad, PAD).astype(jnp.float32)
    if jnp.issubdtype(adj.dtype, jnp.integer):
        # aggr='add': integer edge counts, exact in int8 for counts <= 127.
        adj_p = _pad2d(adj, n_pad, n_pad).astype(jnp.int8)
    else:
        # aggr='mean': normalized weights, ship as bf16.
        adj_p = _pad2d(adj, n_pad, n_pad).astype(jnp.bfloat16)

    wmlp = _pad2d(params["w_mlp_t"], f_pad, PAD).astype(jnp.bfloat16)
    bmlp = _pad2d(params["b_mlp"], 1, PAD).astype(jnp.float32)

    layer_params = []
    for layer in range(1, num_layers + 1):
        p = params[f"layer{layer}"]
        wcat = jnp.concatenate(
            [_pad2d(p["w_conv"], PAD, PAD), _pad2d(p["w_lin_t"], PAD, PAD)],
            axis=1).astype(jnp.bfloat16)                       # [PAD, 2*PAD]
        blin = _pad2d(p["b_lin"], 1, PAD).astype(jnp.float32)
        wg = _pad2d(p["w_g_t"], PAD, PAD).astype(jnp.bfloat16)
        bg = _pad2d(p["b_g"], 1, PAD).astype(jnp.float32)
        layer_params.append((wcat, blin, wg, bg))
    return feat_p, id_p, adj_p, wmlp, bmlp, layer_params, n_pad, f_pad


def gcn_forward(features, id_embedding, adj, params, num_layers,
                tm=ROW_TILE, adj_buffers=2):
    n = features.shape[0]
    dim_id = id_embedding.shape[1]
    (feat_p, id_p, adj_p, wmlp, bmlp,
     layer_params, n_pad, f_pad) = _prepare_inputs(
        features, id_embedding, adj, params, num_layers, tm)

    wcat1, blin1, _, _ = layer_params[0]
    xw, xhat = _run_pre(feat_p, id_p, wmlp, bmlp, wcat1, blin1,
                        n_pad, f_pad, tm)
    out = None
    for layer in range(num_layers):
        _, _, wg, bg = layer_params[layer]
        if layer + 1 < num_layers:
            wcat_next, blin_next, _, _ = layer_params[layer + 1]
            xw, xhat = _run_layer_mid(adj_p, xhat, id_p, xw, wg, bg,
                                      wcat_next, blin_next, n_pad, tm,
                                      adj_buffers)
        else:
            out = _run_layer_last(adj_p, xhat, xw, wg, bg, n_pad, tm,
                                  adj_buffers)
    return out[:n, :dim_id]


# ---------------------------------------------------------------------------
# Deterministic parameter construction (xavier-normal-style, unpadded f32)
# ---------------------------------------------------------------------------
def xavier_normal(key, shape):
    fan_a, fan_b = shape
    std = math.sqrt(2.0 / (fan_a + fan_b))
    return std * jax.random.normal(key, shape, dtype=jnp.float32)


def build_params(key, dim_feat, dim_latent, dim_id, num_layers):
    keys = jax.random.split(key, 4 + 6 * num_layers)
    k = iter(range(len(keys)))
    params = {}
    params["w_mlp_t"] = xavier_normal(keys[next(k)], (dim_latent, dim_feat)).T
    params["b_mlp"] = 0.01 * jax.random.normal(
        keys[next(k)], (1, dim_latent), dtype=jnp.float32)
    d_in = dim_latent
    for layer in range(1, num_layers + 1):
        lp = {}
        lp["w_conv"] = xavier_normal(keys[next(k)], (d_in, d_in))
        lp["w_lin_t"] = xavier_normal(keys[next(k)], (dim_id, d_in)).T
        lp["b_lin"] = 0.01 * jax.random.normal(
            keys[next(k)], (1, dim_id), dtype=jnp.float32)
        lp["w_g_t"] = xavier_normal(keys[next(k)], (dim_id, d_in)).T
        lp["b_g"] = 0.01 * jax.random.normal(
            keys[next(k)], (1, dim_id), dtype=jnp.float32)
        params[f"layer{layer}"] = lp
        d_in = dim_id
    return params


def build_adjacency(edge_index, num_node, aggr="add"):
    # A[dst, src] += 1 for each edge (src -> dst); PyG flow source_to_target.
    src, dst = edge_index
    adj = jnp.zeros((num_node, num_node), dtype=jnp.int32)
    adj = adj.at[dst, src].add(1)
    if aggr == "mean":
        adj = adj.astype(jnp.float32)
        deg = jnp.maximum(adj.sum(axis=1, keepdims=True), 1.0)
        adj = adj / deg
    return adj


# ---------------------------------------------------------------------------
# References: (a) bf16-matched (same padding/casts as the kernels, tight tol),
#             (b) pure f32 torch-semantics reference (loose tol).
# ---------------------------------------------------------------------------
def gcn_forward_ref_bf16(features, id_embedding, adj, params, num_layers,
                         tm=ROW_TILE):
    (feat_p, id_p, adj_p, wmlp, bmlp,
     layer_params, n_pad, f_pad) = _prepare_inputs(
        features, id_embedding, adj, params, num_layers, tm)
    adj_b = adj_p.astype(jnp.bfloat16)
    t = jnp.dot(feat_p, wmlp, preferred_element_type=jnp.float32) + bmlp
    ss = jnp.sum(t * t, axis=1, keepdims=True)
    x = t * jnp.minimum(lax.rsqrt(ss), 1.0 / EPS)
    for (wcat, blin, wg, bg) in layer_params:
        cat = jnp.dot(x.astype(jnp.bfloat16), wcat,
                      preferred_element_type=jnp.float32)
        xw = cat[:, :PAD].astype(jnp.bfloat16)
        xhat = _leaky_relu(cat[:, PAD:] + blin) + id_p
        h = _leaky_relu(jnp.dot(adj_b, xw, preferred_element_type=jnp.float32))
        g = jnp.dot(h.astype(jnp.bfloat16), wg,
                    preferred_element_type=jnp.float32) + bg
        x = _leaky_relu(g + xhat)
    return x[:features.shape[0], :id_embedding.shape[1]]


def gcn_forward_ref_f32(features, id_embedding, adj, params, num_layers):
    adj_f = adj.astype(jnp.float32)
    t = features @ params["w_mlp_t"] + params["b_mlp"]
    x = t / jnp.maximum(jnp.linalg.norm(t, axis=1, keepdims=True), EPS)
    for layer in range(1, num_layers + 1):
        p = params[f"layer{layer}"]
        h = _leaky_relu(adj_f @ (x @ p["w_conv"]))
        x_hat = _leaky_relu(x @ p["w_lin_t"] + p["b_lin"]) + id_embedding
        x = _leaky_relu((x @ jnp.zeros_like(p["w_g_t"]) * 0.0
                         + h @ p["w_g_t"] + p["b_g"]) + x_hat)
    return x


if __name__ == "__main__":
    # Small, module-consistent shapes
    num_node = 64
    dim_feat = 48
    dim_latent = 32
    dim_id = 32
    num_layers = 2
    aggr_mode = "add"

    key = jax.random.PRNGKey(0)
    k_feat, k_id, k_param, _ = jax.random.split(key, 4)

    features = jax.random.normal(k_feat, (num_node, dim_feat),
                                 dtype=jnp.float32)
    id_embedding = jax.random.normal(k_id, (num_node, dim_id),
                                     dtype=jnp.float32)

    # Deterministic synthetic graph: bidirectional ring + a few skip edges.
    src_ring = jnp.arange(num_node)
    dst_ring = (src_ring + 1) % num_node
    skip_src = jnp.arange(0, num_node, 4)
    skip_dst = (skip_src + 7) % num_node
    src = jnp.concatenate([src_ring, dst_ring, skip_src])
    dst = jnp.concatenate([dst_ring, src_ring, skip_dst])
    edge_index = jnp.stack([src, dst])  # (2, E), row0=source, row1=target

    adj = build_adjacency(edge_index, num_node, aggr=aggr_mode)
    params = build_params(k_param, dim_feat, dim_latent, dim_id, num_layers)

    out = gcn_forward(features, id_embedding, adj, params, num_layers)
    out = jax.block_until_ready(out)
    assert out.shape == (num_node, dim_id)

    # Tight check against a reference with identical bf16/int8 quantization.
    ref_bf16 = gcn_forward_ref_bf16(features, id_embedding, adj, params,
                                    num_layers)
    assert jnp.allclose(out, ref_bf16, atol=1e-3, rtol=1e-3), \
        "mismatch vs bf16-matched reference"

    # Loose fidelity check against the full-f32 (torch-semantics) reference;
    # difference is only bf16 matmul quantization.
    ref_f32 = gcn_forward_ref_f32(features, id_embedding, adj, params,
                                  num_layers)
    rel_err = jnp.max(jnp.abs(out - ref_f32) / (1.0 + jnp.abs(ref_f32)))
    assert float(rel_err) < 0.1, f"bf16 drift too large: {float(rel_err)}"

    print("KERNEL_OK")
</pallas_src>

<mosaic_0001>
module attributes {stable_mosaic.version = 11 : i64} {
  func.func @_pre_kernel(%arg0: i32, %arg1: memref<256x128xbf16, #tpu.memory_space<vmem>>, %arg2: memref<256x128xf32, #tpu.memory_space<vmem>>, %arg3: memref<128x128xbf16, #tpu.memory_space<vmem>>, %arg4: memref<1x128xf32, #tpu.memory_space<vmem>>, %arg5: memref<128x256xbf16, #tpu.memory_space<vmem>>, %arg6: memref<1x128xf32, #tpu.memory_space<vmem>>, %arg7: memref<256x128xbf16, #tpu.memory_space<vmem>>, %arg8: memref<256x128xf32, #tpu.memory_space<vmem>>) attributes {dimension_semantics = [#tpu.dimension_semantics<parallel>], iteration_bounds = array<i64: 1>, scalar_prefetch = 0 : i64, scratch_operands = 0 : i64, tpu.core_type = #tpu.core_type<tc>, window_params = [{transform_indices = @transform_0, window_bounds = array<i64: 256, 128>}, {transform_indices = @transform_1, window_bounds = array<i64: 256, 128>}, {pipeline_mode = #tpu.pipeline_mode<synchronous>, transform_indices = @transform_2, window_bounds = array<i64: 128, 128>}, {pipeline_mode = #tpu.pipeline_mode<synchronous>, transform_indices = @transform_3, window_bounds = array<i64: 1, 128>}, {pipeline_mode = #tpu.pipeline_mode<synchronous>, transform_indices = @transform_4, window_bounds = array<i64: 128, 256>}, {pipeline_mode = #tpu.pipeline_mode<synchronous>, transform_indices = @transform_5, window_bounds = array<i64: 1, 128>}, {transform_indices = @transform_6, window_bounds = array<i64: 256, 128>}, {transform_indices = @transform_7, window_bounds = array<i64: 256, 128>}]} {
    %c0 = arith.constant 0 : index
    %c0_0 = arith.constant 0 : index
    %0 = vector.load %arg1[%c0, %c0_0] : memref<256x128xbf16, #tpu.memory_space<vmem>>, vector<256x128xbf16>
    %c0_1 = arith.constant 0 : index
    %c0_2 = arith.constant 0 : index
    %1 = vector.load %arg3[%c0_1, %c0_2] : memref<128x128xbf16, #tpu.memory_space<vmem>>, vector<128x128xbf16>
    %cst = arith.constant dense<0.000000e+00> : vector<256x128xf32>
    %2 = tpu.matmul %0, %1, %cst {dimension_numbers = #tpu.dot_dimension_numbers<[1], [0], [0], [1], [0, 0, 1, 1], [], []>} : vector<256x128xbf16>, vector<128x128xbf16>, vector<256x128xf32> -> vector<256x128xf32>
    %c0_3 = arith.constant 0 : index
    %c0_4 = arith.constant 0 : index
    %3 = vector.load %arg4[%c0_3, %c0_4] : memref<1x128xf32, #tpu.memory_space<vmem>>, vector<1x128xf32>
    %4 = vector.broadcast %3 : vector<1x128xf32> to vector<256x128xf32>
    %5 = arith.addf %2, %4 : vector<256x128xf32>
    %6 = arith.mulf %5, %5 : vector<256x128xf32>
    %cst_5 = arith.constant dense<0.000000e+00> : vector<256xf32>
    %7 = vector.multi_reduction <add>, %6, %cst_5 [1] : vector<256x128xf32> to vector<256xf32>
    %8 = vector.shape_cast %7 : vector<256xf32> to vector<256x1xf32>
    %9 = math.rsqrt %8 : vector<256x1xf32>
    %cst_6 = arith.constant 9.99999995E+11 : f32
    %10 = vector.broadcast %cst_6 : f32 to vector<256x1xf32>
    %11 = arith.minimumf %9, %10 : vector<256x1xf32>
    %12 = vector.broadcast %11 : vector<256x1xf32> to vector<256x128xf32>
    %13 = arith.mulf %5, %12 : vector<256x128xf32>
    %14 = arith.truncf %13 : vector<256x128xf32> to vector<256x128xbf16>
    %c0_7 = arith.constant 0 : index
    %c0_8 = arith.constant 0 : index
    %15 = vector.load %arg5[%c0_7, %c0_8] : memref<128x256xbf16, #tpu.memory_space<vmem>>, vector<128x256xbf16>
    %cst_9 = arith.constant dense<0.000000e+00> : vector<256x256xf32>
    %16 = tpu.matmul %14, %15, %cst_9 {dimension_numbers = #tpu.dot_dimension_numbers<[1], [0], [0], [1], [0, 0, 1, 1], [], []>} : vector<256x128xbf16>, vector<128x256xbf16>, vector<256x256xf32> -> vector<256x256xf32>
    %17 = vector.extract_strided_slice %16 {offsets = [0, 0], sizes = [256, 128], strides = [1, 1]} : vector<256x256xf32> to vector<256x128xf32>
    %18 = arith.truncf %17 : vector<256x128xf32> to vector<256x128xbf16>
    %c0_10 = arith.constant 0 : index
    %c0_11 = arith.constant 0 : index
    %19 = vector.load %arg7[%c0_10, %c0_11] : memref<256x128xbf16, #tpu.memory_space<vmem>>, vector<256x128xbf16>
    tpu.vector_store %arg7[%c0_10, %c0_11], %18 {strides = array<i32>} : memref<256x128xbf16, #tpu.memory_space<vmem>>, vector<256x128xbf16>,
    %20 = vector.extract_strided_slice %16 {offsets = [0, 128], sizes = [256, 128], strides = [1, 1]} : vector<256x256xf32> to vector<256x128xf32>
    %c0_12 = arith.constant 0 : index
    %c0_13 = arith.constant 0 : index
    %21 = vector.load %arg6[%c0_12, %c0_13] : memref<1x128xf32, #tpu.memory_space<vmem>>, vector<1x128xf32>
    %22 = vector.broadcast %21 : vector<1x128xf32> to vector<256x128xf32>
    %23 = arith.addf %20, %22 : vector<256x128xf32>
    %cst_14 = arith.constant 0.00999999977 : f32
    %24 = vector.broadcast %cst_14 : f32 to vector<256x128xf32>
    %25 = arith.mulf %24, %23 : vector<256x128xf32>
    %26 = arith.maximumf %23, %25 : vector<256x128xf32>
    %c0_15 = arith.constant 0 : index
    %c0_16 = arith.constant 0 : index
    %27 = vector.load %arg2[%c0_15, %c0_16] : memref<256x128xf32, #tpu.memory_space<vmem>>, vector<256x128xf32>
    %28 = arith.addf %26, %27 : vector<256x128xf32>
    %c0_17 = arith.constant 0 : index
    %c0_18 = arith.constant 0 : index
    %29 = vector.load %arg8[%c0_17, %c0_18] : memref<256x128xf32, #tpu.memory_space<vmem>>, vector<256x128xf32>
    tpu.vector_store %arg8[%c0_17, %c0_18], %28 {strides = array<i32>} : memref<256x128xf32, #tpu.memory_space<vmem>>, vector<256x128xf32>,
    return
  }
  func.func @transform_0(%arg0: i32) -> (i32, i32) {
    %c0_i32 = arith.constant 0 : i32
    %c0_i32_0 = arith.constant 0 : i32
    return %arg0, %c0_i32 : i32, i32
  }
  func.func @transform_1(%arg0: i32) -> (i32, i32) {
    %c0_i32 = arith.constant 0 : i32
    %c0_i32_0 = arith.constant 0 : i32
    return %arg0, %c0_i32 : i32, i32
  }
  func.func @transform_2(%arg0: i32) -> (i32, i32) {
    %c0_i32 = arith.constant 0 : i32
    %c0_i32_0 = arith.constant 0 : i32
    %c0_i32_1 = arith.constant 0 : i32
    return %c0_i32, %c0_i32_0 : i32, i32
  }
  func.func @transform_3(%arg0: i32) -> (i32, i32) {
    %c0_i32 = arith.constant 0 : i32
    %c0_i32_0 = arith.constant 0 : i32
    %c0_i32_1 = arith.constant 0 : i32
    return %c0_i32, %c0_i32_0 : i32, i32
  }
  func.func @transform_4(%arg0: i32) -> (i32, i32) {
    %c0_i32 = arith.constant 0 : i32
    %c0_i32_0 = arith.constant 0 : i32
    %c0_i32_1 = arith.constant 0 : i32
    return %c0_i32, %c0_i32_0 : i32, i32
  }
  func.func @transform_5(%arg0: i32) -> (i32, i32) {
    %c0_i32 = arith.constant 0 : i32
    %c0_i32_0 = arith.constant 0 : i32
    %c0_i32_1 = arith.constant 0 : i32
    return %c0_i32, %c0_i32_0 : i32, i32
  }
  func.func @transform_6(%arg0: i32) -> (i32, i32) {
    %c0_i32 = arith.constant 0 : i32
    %c0_i32_0 = arith.constant 0 : i32
    return %arg0, %c0_i32 : i32, i32
  }
  func.func @transform_7(%arg0: i32) -> (i32, i32) {
    %c0_i32 = arith.constant 0 : i32
    %c0_i32_0 = arith.constant 0 : i32
    return %arg0, %c0_i32 : i32, i32
  }
}

</mosaic_0001>

<bundles_post_ra>
// kernel: tpu_custom_call.1
= control target key start
LH: loop header
LB: loop body
LE: loop exit
PB: predicated region body
PF: predicated region fallthrough
CT: control target
= control target key end

     0   :  { %13 = vsyncpa [#allocation3], 0  ;;  %s2255_s0 = inlined_call_operand.hbm [shape: bf16[256,128], index: 0, kind: input, shape index: {}]   ;;  %s2256_s1 = inlined_call_operand.hbm [shape: f32[256,128], index: 1, kind: input, shape index: {}]   ;;  %s2257_s2 = inlined_call_operand.hbm [shape: bf16[128,128], index: 2, kind: input, shape index: {}]   ;;  %s2258_s3 = inlined_call_operand.vmem [shape: f32[1,128], index: 3, kind: input, shape index: {}]   ;;  %s2259_s4 = inlined_call_operand.hbm [shape: bf16[128,256], index: 4, kind: input, shape index: {}]   ;;  %s2260_s5 = inlined_call_operand.vmem [shape: f32[1,128], index: 5, kind: input, shape index: {}]   ;;  %s2261_s6 = inlined_call_operand.hbm [shape: bf16[256,128], index: 6, kind: output, shape index: {0}]   ;;  %s2262_s7 = inlined_call_operand.hbm [shape: f32[256,128], index: 7, kind: output, shape index: {1}]  }
   0x1   :  { %14 = vsyncpa [#allocation6], 0 }
   0x2   :  { %15 = vsyncpa [#allocation9], 0 }
   0x3   :  { %16 = vsyncpa [#allocation4], 0 }
   0x4   :  { %17 = vsyncpa [#allocation12], 0  ;;  %s1876_s24 = smov [#allocation5]  }
   0x5   :  { %s35_s25 = sshll.u32 %s1876_s24, 4  ;;  %s36_s25 = int_to_ptr.vmem [resolvable:$true] %s35_s25 }
   0x6   :  { %s1754_s26 = scalar_lea.vmem %s36_s25, 4096  ;;  %p1759_p1 = scmp.lt.s32.totalorder %s36_s25, %s36_s25 }
   0x7   :  { %p1755_p0 = scmp.ne.s32.totalorder %s36_s25, %s1754_s26  ;;  %p1760_p2 = scmp.lt.s32.totalorder %s1754_s26, %s1754_s26 }
   0x9   :  { %p1761_p3 = por %p1760_p2, %p1759_p1 }
   0xb   :  { %p1762_p4 = pnand %p1761_p3, %p1755_p0 }
   0xd   :  { %1765 = shalt.err (!%p1762_p4)
}
   0xe   :  { %s1877_s27 = smov 128   ;;  %s1878_s28 = smov 8  }
   0xf   :  { %41 = dma.hbm_to_vmem [thread:$0]  %s2256_s1, 4096, %s36_s25, [#allocation6], %s1877_s27, %s1877_s27, %s1878_s28  }
  0x10   :  { %s1879_s8 = smov [#allocation2]  }
  0x11   :  { %s23_s9 = sshll.u32 %s1879_s8, 4  ;;  %s24_s9 = int_to_ptr.vmem [resolvable:$true] %s23_s9 }
  0x12   :  { %s1774_s10 = scalar_lea.vmem %s24_s9, 2048  ;;  %p1779_p6 = scmp.lt.s32.totalorder %s24_s9, %s24_s9 }
  0x13   :  { %p1775_p5 = scmp.ne.s32.totalorder %s24_s9, %s1774_s10  ;;  %p1780_p7 = scmp.lt.s32.totalorder %s1774_s10, %s1774_s10 }
  0x15   :  { %p1781_p8 = por %p1780_p7, %p1779_p6 }
  0x17   :  { %p1782_p9 = pnand %p1781_p8, %p1775_p5 }
  0x19   :  { %1785 = shalt.err (!%p1782_p9)
}
  0x1a   :  { %s1880_s11 = smov 64   ;;  %s1881_s12 = smov 4  }
  0x1b   :  { %29 = dma.hbm_to_vmem [thread:$0]  %s2255_s0, 2048, %s24_s9, [#allocation3], %s1880_s11, %s1880_s11, %s1881_s12  }
  0x1c   :  { %s1882_s1 = smov [#allocation7]   ;;  %s1883_s16 = smov [#allocation8]  }
  0x1d   :  { %s47_s15 = sshll.u32 %s1882_s1, 4  ;;  %s61_s17 = sshll.u32 %s1883_s16, 4  ;;  %s48_s15 = int_to_ptr.vmem [resolvable:$true] %s47_s15  ;;  %s62_s17 = int_to_ptr.vmem [resolvable:$true] %s61_s17 }
  0x1e   :  { %s1794_s18 = scalar_lea.vmem %s48_s15, 1024  ;;  %p1799_p11 = scmp.lt.s32.totalorder %s48_s15, %s48_s15 }
  0x1f   :  { %p1795_p10 = scmp.ne.s32.totalorder %s48_s15, %s1794_s18  ;;  %p1800_p12 = scmp.lt.s32.totalorder %s1794_s18, %s1794_s18 }
  0x21   :  { %p1801_p13 = por %p1800_p12, %p1799_p11 }
  0x23   :  { %p1802_p0 = pnand %p1801_p13, %p1795_p10 }
  0x25   :  { %1805 = shalt.err (!%p1802_p0)
}
  0x26   :  { %53 = dma.hbm_to_vmem [thread:$0]  %s2257_s2, 1024, %s48_s15, [#allocation6], %s1880_s11, %s1880_s11, %s1881_s12  }
  0x27   :  { %s1814_s0 = scalar_lea.vmem %s62_s17, 2048  ;;  %p1819_p2 = scmp.lt.s32.totalorder %s62_s17, %s62_s17 }
  0x28   :  { %p1815_p1 = scmp.ne.s32.totalorder %s62_s17, %s1814_s0  ;;  %p1820_p3 = scmp.lt.s32.totalorder %s1814_s0, %s1814_s0 }
  0x2a   :  { %p1821_p4 = por %p1820_p3, %p1819_p2 }
  0x2c   :  { %p1822_p5 = pnand %p1821_p4, %p1815_p1 }
  0x2e   :  { %1825 = shalt.err (!%p1822_p5)
}
  0x2f   :  { %67 = dma.hbm_to_vmem [thread:$0]  %s2259_s4, 2048, %s62_s17, [#allocation9], %s1877_s27, %s1877_s27, %s1878_s28  }
  0x30   :  { %1866 = dma.done.wait [#allocation3], 2048  }
  0x31   :  { %1867 = vsyncadd [#allocation3], 4294965248 }
  0x32   :  { %1868 = dma.done.wait [#allocation6], 5120  }
  0x33   :  { %1869 = vsyncadd [#allocation6], 4294962176 }
  0x34   :  { %1870 = dma.done.wait [#allocation9], 2048  }
  0x35   :  { %1871 = vsyncadd [#allocation9], 4294965248  ;;  %v1634_v0 = vld [vmem:[#allocation7 + $0x38] sm:$0xff]   ;;  %v1635_v1 = vld [vmem:[#allocation7 + $0x30] sm:$0xff]  }
  0x36   :  { %1559 = vmatprep.subr.bf16.mxu0 %v1634_v0  ;;  %v1636_v2 = vld [vmem:[#allocation7 + $0x28] sm:$0xff]   ;;  %v1637_v3 = vld [vmem:[#allocation7 + $0x20] sm:$0xff]   ;;  %v1638_v5 = vld [vmem:[#allocation7 + $0x18] sm:$0xff]  }
  0x37   :  { %1560 = vmatpush3.bf16.msra.mxu0 %v1634_v0  ;;  %v1642_v4 = vld [vmem:[#allocation2] sm:$0xff]   ;;  %v1639_v6 = vld [vmem:[#allocation7 + $0x10] sm:$0xff]   ;;  %v1640_v7 = vld [vmem:[#allocation7 + $0x8] sm:$0xff]  }
  0x38   :  { %1561 = vmatprep.subr.bf16.mxu0 %v1635_v1  ;;  %1575 = vmatprep.mubr.bf16.mxu0 %v1642_v4  ;;  %v1641_v8 = vld [vmem:[#allocation7] sm:$0xff]   ;;  %v1643_v9 = vld [vmem:[#allocation2 + $0x8] sm:$0xff]   ;;  %v1644_v10 = vld [vmem:[#allocation2 + $0x10] sm:$0xff]  }
  0x39   :  { %v1645_v11 = vld [vmem:[#allocation2 + $0x18] sm:$0xff]   ;;  %v1646_v12 = vld [vmem:[#allocation2 + $0x20] sm:$0xff]   ;;  %v1647_v13 = vld [vmem:[#allocation2 + $0x28] sm:$0xff]  }
  0x3a   :  { %v1648_v14 = vld [vmem:[#allocation2 + $0x30] sm:$0xff]   ;;  %v1649_v15 = vld [vmem:[#allocation2 + $0x38] sm:$0xff]   ;;  %v1650_v16 = vld [vmem:[#allocation2 + $0x40] sm:$0xff]  }
  0x3b   :  { %1562 = vmatpush3.bf16.msra.mxu0 %v1635_v1  ;;  %v1651_v17 = vld [vmem:[#allocation2 + $0x48] sm:$0xff]   ;;  %v1652_v18 = vld [vmem:[#allocation2 + $0x50] sm:$0xff]   ;;  %v1653_v19 = vld [vmem:[#allocation2 + $0x58] sm:$0xff]  }
  0x3c   :  { %1563 = vmatprep.subr.bf16.mxu0 %v1636_v2  ;;  %v1654_v20 = vld [vmem:[#allocation2 + $0x60] sm:$0xff]   ;;  %v1655_v21 = vld [vmem:[#allocation2 + $0x68] sm:$0xff]   ;;  %v1656_v22 = vld [vmem:[#allocation2 + $0x70] sm:$0xff]  }
  0x3d   :  { %v1657_v23 = vld [vmem:[#allocation2 + $0x78] sm:$0xff]   ;;  %v1661_v26 = vld [vmem:[#allocation8 + $0x64] ss:$8 sps:$4 sm:$0xff]   ;;  %v1663_v27 = vld [vmem:[#allocation8 + $0x60] ss:$8 sps:$4 sm:$0xff]  }
  0x3e   :  { %v1658_v24 = vld [vmem:[#allocation8 + $0x74] ss:$8 sps:$4 sm:$0xff]   ;;  %v1660_v25 = vld [vmem:[#allocation8 + $0x70] ss:$8 sps:$4 sm:$0xff]   ;;  %v1970_v36 = vld [vmem:[%s2258_s3] ss:$0 sm:$0xff] }
  0x3f   :  { %1564 = vmatpush3.bf16.msra.mxu0 %v1636_v2  ;;  %1607 = vmatprep.subr.bf16.mxu1 %v1658_v24  ;;  %v1664_v58 = vld [vmem:[#allocation8 + $0x54] ss:$8 sps:$4 sm:$0xff]   ;;  %v1666_v60 = vld [vmem:[#allocation8 + $0x50] ss:$8 sps:$4 sm:$0xff]   ;;  %v1667_v2 = vld [vmem:[#allocation8 + $0x44] ss:$8 sps:$4 sm:$0xff]  }
  0x40   :  { %1565 = vmatprep.subr.bf16.mxu0 %v1637_v3  ;;  %1615 = vmatpush1.bf16.msra.mxu1 %v1660_v25  ;;  %v1669_v4 = vld [vmem:[#allocation8 + $0x40] ss:$8 sps:$4 sm:$0xff]  }
  0x41   :  { %1608 = vmatprep.subr.bf16.mxu1 %v1661_v26 }
  0x43   :  { %1566 = vmatpush3.bf16.msra.mxu0 %v1637_v3 }
  0x44   :  { %1567 = vmatprep.subr.bf16.mxu0 %v1638_v5  ;;  %1616 = vmatpush1.bf16.msra.mxu1 %v1663_v27 }
  0x45   :  { %1609 = vmatprep.subr.bf16.mxu1 %v1664_v58 }
  0x47   :  { %1568 = vmatpush3.bf16.msra.mxu0 %v1638_v5 }
  0x48   :  { %1569 = vmatprep.subr.bf16.mxu0 %v1639_v6  ;;  %1617 = vmatpush1.bf16.msra.mxu1 %v1666_v60 }
  0x49   :  { %1610 = vmatprep.subr.bf16.mxu1 %v1667_v2 }
  0x4b   :  { %1570 = vmatpush3.bf16.msra.mxu0 %v1639_v6 }
  0x4c   :  { %1571 = vmatprep.subr.bf16.mxu0 %v1640_v7  ;;  %1618 = vmatpush1.bf16.msra.mxu1 %v1669_v4 }
  0x4f   :  { %1572 = vmatpush3.bf16.msra.mxu0 %v1640_v7 }
  0x50   :  { %1573 = vmatprep.subr.bf16.mxu0 %v1641_v8 }
  0x53   :  { %1574 = vmatpush3.bf16.msra.mxu0 %v1641_v8 }
  0x54   :  { %747 = vmatprep.subr.bf16.mxu0 %v1658_v24 }
  0x56   :  { %1576 = vmatmul.mubr.bf16.vlgmr.msra.gmra.mxu0 %v1643_v9 }
  0x57   :  { %1579 = vmatprep.mubr.bf16.mxu0 %v1644_v10  ;;  %748 = vmatpush1.bf16.msra.mxu0 %v1660_v25 }
  0x58   :  { %749 = vmatprep.subr.bf16.mxu0 %v1661_v26 }
  0x5b   :  { %750 = vmatpush1.bf16.msra.mxu0 %v1663_v27 }
  0x5c   :  { %751 = vmatprep.subr.bf16.mxu0 %v1664_v58 }
  0x5e   :  { %1580 = vmatmul.mubr.bf16.gmra.mxu0 %v1645_v11  ;;  %v1670_v11 = vld [vmem:[#allocation8 + $0x34] ss:$8 sps:$4 sm:$0xff]  }
  0x5f   :  { %1583 = vmatprep.mubr.bf16.mxu0 %v1646_v12  ;;  %752 = vmatpush1.bf16.msra.mxu0 %v1666_v60  ;;  %v1884_v60 = vmov 0  }
  0x60   :  { %753 = vmatprep.subr.bf16.mxu0 %v1667_v2  ;;  %1611 = vmatprep.subr.bf16.mxu1 %v1670_v11 }
  0x61   :  { %819 = vmatprep.mubr.bf16.mxu1 %v1884_v60 }
  0x63   :  { %754 = vmatpush1.bf16.msra.mxu0 %v1669_v4 }
  0x64   :  { %755 = vmatprep.subr.bf16.mxu0 %v1670_v11 }
  0x66   :  { %1584 = vmatmul.mubr.bf16.gmra.mxu0 %v1647_v13  ;;  %v1672_v13 = vld [vmem:[#allocation8 + $0x30] ss:$8 sps:$4 sm:$0xff]  }
  0x67   :  { %1587 = vmatprep.mubr.bf16.mxu0 %v1648_v14  ;;  %1619 = vmatpush1.bf16.msra.mxu1 %v1672_v13 }
  0x68   :  { %756 = vmatpush1.bf16.msra.mxu0 %v1672_v13 }
  0x6e   :  { %1588 = vmatmul.mubr.bf16.gmra.mxu0 %v1649_v15 }
  0x6f   :  { %1591 = vmatprep.mubr.bf16.mxu0 %v1650_v16 }
  0x76   :  { %1592 = vmatmul.mubr.bf16.gmra.mxu0 %v1651_v17 }
  0x77   :  { %1595 = vmatprep.mubr.bf16.mxu0 %v1652_v18 }
  0x7e   :  { %1596 = vmatmul.mubr.bf16.gmra.mxu0 %v1653_v19 }
  0x7f   :  { %1599 = vmatprep.mubr.bf16.mxu0 %v1654_v20  ;;  %v1673_v20 = vld [vmem:[#allocation8 + $0x24] ss:$8 sps:$4 sm:$0xff]  }
  0x80   :  { %1612 = vmatprep.subr.bf16.mxu1 %v1673_v20  ;;  %757 = vmatprep.subr.bf16.mxu0 %v1673_v20 }
  0x86   :  { %1600 = vmatmul.mubr.bf16.gmra.mxu0 %v1655_v21 }
  0x87   :  { %1603 = vmatprep.mubr.bf16.mxu0 %v1656_v22  ;;  %v1675_v22 = vld [vmem:[#allocation8 + $0x20] ss:$8 sps:$4 sm:$0xff]  }
  0x88   :  { %1620 = vmatpush1.bf16.msra.mxu1 %v1675_v22  ;;  %758 = vmatpush1.bf16.msra.mxu0 %v1675_v22 }
  0x8e   :  { %1604 = vmatmul.mubr.bf16.gmra.mxu0 %v1657_v23 }
  0x8f   :  { %779 = vmatprep.mubr.bf16.mxu0 %v1884_v60 }
 0x116   :  { %v1951_v28 = vpop.f32.mrf.mxu0 }
 0x118   :  { %v1953_v29 = vpop.f32.mrf.mxu0 }
 0x11a   :  { %v1955_v30 = vpop.f32.mrf.mxu0 }
 0x11c   :  { %v1957_v31 = vpop.f32.mrf.mxu0 }
 0x11e   :  { %v1959_v32 = vpop.f32.mrf.mxu0 }
 0x120   :  { %v1961_v33 = vpop.f32.mrf.mxu0 }
 0x122   :  { %v1963_v34 = vpop.f32.mrf.mxu0 }
 0x124   :  { %v1965_v35 = vpop.f32.mrf.mxu0 }
 0x125   :  { %v2107_v13 = vadd.f32 %v1970_v36, %v1965_v35 }
 0x126   :  { %v1585_v37 = vpop.f32.mrf.mxu0 }
 0x127   :  { %v1973_v38 = vadd.f32 %v1585_v37, %v1970_v36  ;;  %v1676_v37 = vld [vmem:[#allocation8 + $0x14] ss:$8 sps:$4 sm:$0xff]  }
 0x128   :  { %v348_v39 = vpop.f32.mrf.mxu0  ;;  %1613 = vmatprep.subr.bf16.mxu1 %v1676_v37  ;;  %759 = vmatprep.subr.bf16.mxu0 %v1676_v37 }
 0x129   :  { %v1976_v40 = vadd.f32 %v1970_v36, %v348_v39  ;;  %v453_v41 = vmul.f32 %v1973_v38, %v1973_v38  ;;  %v2050_v39 = vadd.f32 %v1970_v36, %v1953_v29  ;;  %v2061_v29 = vadd.f32 %v1970_v36, %v1957_v31 }
 0x12a   :  { %v1586_v42 = vpop.f32.mrf.mxu0  ;;  %v2072_v31 = vadd.f32 %v1951_v28, %v1970_v36  ;;  %v2085_v28 = vadd.f32 %v1955_v30, %v1970_v36 }
 0x12b   :  { %v1981_v43 = vadd.f32 %v1586_v42, %v1970_v36  ;;  %495 = vadd.xlane.f32.xlu1 %v453_v41  ;;  %v451_v44 = vmul.f32 %v1976_v40, %v1976_v40  ;;  %v1678_v42 = vld [vmem:[#allocation8 + $0x10] ss:$8 sps:$4 sm:$0xff]  }
 0x12c   :  { %v351_v45 = vpop.f32.mrf.mxu0  ;;  %1621 = vmatpush1.bf16.msra.mxu1 %v1678_v42  ;;  %760 = vmatpush1.bf16.msra.mxu0 %v1678_v42  ;;  %v446_v30 = vmul.f32 %v2085_v28, %v2085_v28 }
 0x12d   :  { %v1986_v46 = vadd.f32 %v1970_v36, %v351_v45  ;;  %491 = vadd.xlane.f32.xlu0 %v451_v44  ;;  %v454_v47 = vmul.f32 %v1981_v43, %v1981_v43 }
 0x12e   :  { %v1589_v48 = vpop.f32.mrf.mxu0 }
 0x12f   :  { %497 = vadd.xlane.f32.xlu1 %v454_v47  ;;  %v452_v49 = vmul.f32 %v1986_v46, %v1986_v46  ;;  %v1993_v51 = vadd.f32 %v1589_v48, %v1970_v36 }
 0x130   :  { %v364_v50 = vpop.f32.mrf.mxu0 }
 0x131   :  { %v1996_v52 = vadd.f32 %v1970_v36, %v364_v50  ;;  %493 = vadd.xlane.f32.xlu0 %v452_v49  ;;  %v457_v57 = vmul.f32 %v1993_v51, %v1993_v51  ;;  %v1679_v49 = vld [vmem:[#allocation8 + $0x4] ss:$8 sps:$4 sm:$0xff]   ;;  %v443_v50 = vmul.f32 %v2050_v39, %v2050_v39 }
 0x132   :  { %v1590_v53 = vpop.f32.mrf.mxu0  ;;  %1614 = vmatprep.subr.bf16.mxu1 %v1679_v49  ;;  %761 = vmatprep.subr.bf16.mxu0 %v1679_v49 }
 0x133   :  { %v455_v54 = vmul.f32 %v1996_v52, %v1996_v52  ;;  %v2006_v61 = vadd.f32 %v1590_v53, %v1970_v36  ;;  %v1681_v53 = vld [vmem:[#allocation8] ss:$8 sps:$4 sm:$0xff]  }
 0x134   :  { %v367_v55 = vpop.f32.mrf.mxu0  ;;  %1622 = vmatpush1.bf16.msra.mxu1 %v1681_v53  ;;  %762 = vmatpush1.bf16.msra.mxu0 %v1681_v53 }
 0x135   :  { %v2001_v56 = vadd.f32 %v1970_v36, %v367_v55  ;;  %499 = vadd.xlane.f32.xlu0 %v455_v54  ;;  %v458_v5 = vmul.f32 %v2006_v61, %v2006_v61 }
 0x136   :  { %v1593_v59 = vpop.f32.mrf.mxu0 }
 0x137   :  { %v456_v62 = vmul.f32 %v2001_v56, %v2001_v56  ;;  %v2011_v0 = vadd.f32 %v1593_v59, %v1970_v36  ;;  %v444_v59 = vmul.f32 %v2061_v29, %v2061_v29 }
 0x138   :  { %v380_v63 = vpop.f32.mrf.mxu0 }
 0x139   :  { %v2014_v1 = vadd.f32 %v1970_v36, %v380_v63  ;;  %501 = vadd.xlane.f32.xlu1 %v456_v62  ;;  %503 = vadd.xlane.f32.xlu0 %v457_v57  ;;  %v461_v10 = vmul.f32 %v2011_v0, %v2011_v0 }
 0x13a   :  { %v1594_v3 = vpop.f32.mrf.mxu0 }
 0x13b   :  { %v459_v6 = vmul.f32 %v2014_v1, %v2014_v1  ;;  %v2021_v8 = vadd.f32 %v1594_v3, %v1970_v36  ;;  %v445_v3 = vmul.f32 %v2072_v31, %v2072_v31 }
 0x13c   :  { %v383_v7 = vpop.f32.mrf.mxu0 }
 0x13d   :  { %v2024_v9 = vadd.f32 %v1970_v36, %v383_v7  ;;  %505 = vadd.xlane.f32.xlu1 %v458_v5  ;;  %507 = vadd.xlane.f32.xlu0 %v459_v6  ;;  %v462_v18 = vmul.f32 %v2021_v8, %v2021_v8  ;;  %v2096_v7 = vadd.f32 %v1970_v36, %v1961_v33 }
 0x13e   :  { %v1597_v12 = vpop.f32.mrf.mxu0 }
 0x13f   :  { %v460_v14 = vmul.f32 %v2024_v9, %v2024_v9  ;;  %v2031_v16 = vadd.f32 %v1597_v12, %v1970_v36  ;;  %v447_v33 = vmul.f32 %v2096_v7, %v2096_v7 }
 0x140   :  { %v396_v15 = vpop.f32.mrf.mxu0 }
 0x141   :  { %v2034_v17 = vadd.f32 %v1970_v36, %v396_v15  ;;  %509 = vadd.xlane.f32.xlu1 %v460_v14  ;;  %511 = vadd.xlane.f32.xlu0 %v461_v10  ;;  %v465_v26 = vmul.f32 %v2031_v16, %v2031_v16 }
 0x142   :  { %v1598_v19 = vpop.f32.mrf.mxu0 }
 0x143   :  { %v463_v21 = vmul.f32 %v2034_v17, %v2034_v17  ;;  %v2041_v24 = vadd.f32 %v1598_v19, %v1970_v36  ;;  %v448_v19 = vmul.f32 %v2107_v13, %v2107_v13 }
 0x144   :  { %v399_v23 = vpop.f32.mrf.mxu0 }
 0x145   :  { %v2044_v25 = vadd.f32 %v1970_v36, %v399_v23  ;;  %513 = vadd.xlane.f32.xlu1 %v462_v18  ;;  %515 = vadd.xlane.f32.xlu0 %v463_v21  ;;  %v466_v47 = vmul.f32 %v2041_v24, %v2041_v24  ;;  %v2118_v18 = vadd.f32 %v1959_v32, %v1970_v36 }
 0x146   :  { %v1601_v27 = vpop.f32.mrf.mxu0  ;;  %v2129_v21 = vadd.f32 %v1963_v34, %v1970_v36 }
 0x147   :  { %v464_v41 = vmul.f32 %v2044_v25, %v2044_v25  ;;  %v2079_v62 = vadd.f32 %v1601_v27, %v1970_v36  ;;  %v449_v22 = vmul.f32 %v2118_v18, %v2118_v18 }
 0x148   :  { %v412_v44 = vpop.f32.mrf.mxu0 }
 0x149   :  { %517 = vadd.xlane.f32.xlu1 %v464_v41  ;;  %519 = vadd.xlane.f32.xlu0 %v465_v26  ;;  %v2055_v45 = vadd.f32 %v1970_v36, %v412_v44  ;;  %v469_v5 = vmul.f32 %v2079_v62, %v2079_v62  ;;  %v450_v26 = vmul.f32 %v2129_v21, %v2129_v21 }
 0x14a   :  { %v1602_v48 = vpop.f32.mrf.mxu0 }
 0x14b   :  { %v467_v57 = vmul.f32 %v2055_v45, %v2055_v45  ;;  %v2090_v4 = vadd.f32 %v1602_v48, %v1970_v36 }
 0x14c   :  { %v415_v54 = vpop.f32.mrf.mxu0 }
 0x14d   :  { %521 = vadd.xlane.f32.xlu1 %v466_v47  ;;  %475 = vadd.xlane.f32.xlu0 %v443_v50  ;;  %v2066_v55 = vadd.f32 %v1970_v36, %v415_v54  ;;  %v470_v11 = vmul.f32 %v2090_v4, %v2090_v4 }
 0x14e   :  { %v1605_v58 = vpop.f32.mrf.mxu0 }
 0x14f   :  { %v468_v63 = vmul.f32 %v2066_v55, %v2066_v55  ;;  %v2123_v35 = vadd.f32 %v1605_v58, %v1970_v36 }
 0x150   :  { %v428_v2 = vpop.f32.mrf.mxu0 }
 0x151   :  { %477 = vadd.xlane.f32.xlu1 %v444_v59  ;;  %523 = vadd.xlane.f32.xlu0 %v467_v57  ;;  %v2101_v10 = vadd.f32 %v1970_v36, %v428_v2  ;;  %v473_v23 = vmul.f32 %v2123_v35, %v2123_v35 }
 0x152   :  { %v1606_v6 = vpop.f32.mrf.mxu0 }
 0x153   :  { %v471_v15 = vmul.f32 %v2101_v10, %v2101_v10  ;;  %v2134_v32 = vadd.f32 %v1606_v6, %v1970_v36 }
 0x154   :  { %v431_v12 = vpop.f32.mrf.mxu0 }
 0x155   :  { %525 = vadd.xlane.f32.xlu1 %v468_v63  ;;  %479 = vadd.xlane.f32.xlu0 %v445_v3  ;;  %v2112_v14 = vadd.f32 %v1970_v36, %v431_v12  ;;  %v474_v34 = vmul.f32 %v2134_v32, %v2134_v32 }
 0x157   :  { %v472_v20 = vmul.f32 %v2112_v14, %v2112_v14 }
 0x159   :  { %481 = vadd.xlane.f32.xlu1 %v446_v30  ;;  %527 = vadd.xlane.f32.xlu0 %v469_v5 }
 0x15d   :  { %529 = vadd.xlane.f32.xlu1 %v470_v11  ;;  %483 = vadd.xlane.f32.xlu0 %v447_v33 }
 0x161   :  { %485 = vadd.xlane.f32.xlu1 %v448_v19  ;;  %531 = vadd.xlane.f32.xlu0 %v471_v15 }
 0x165   :  { %533 = vadd.xlane.f32.xlu1 %v472_v20  ;;  %487 = vadd.xlane.f32.xlu0 %v449_v22 }
 0x169   :  { %489 = vadd.xlane.f32.xlu1 %v450_v26  ;;  %535 = vadd.xlane.f32.xlu0 %v473_v23 }
 0x16d   :  { %537 = vadd.xlane.f32.xlu1 %v474_v34 }
 0x1b4   :  { %v496_v27 = vpop.xlane.xlu1 %495 }
 0x1b6   :  { %v492_v37 = vpop.xlane.xlu0 %491 }
 0x1b7   :  { %1682 = vrsqrt.f32 %v492_v37 }
 0x1b8   :  { %v498_v41 = vpop.xlane.xlu1 %497 }
 0x1ba   :  { %v494_v36 = vpop.xlane.xlu0 %493 }
 0x1bb   :  { %1684 = vrsqrt.f32 %v494_v36 }
 0x1bc   :  { %1686 = vrsqrt.f32 %v498_v41 }
 0x1bd   :  { %1688 = vrsqrt.f32 %v496_v27 }
 0x1be   :  { %v500_v42 = vpop.xlane.xlu0 %499 }
 0x1c2   :  { %v502_v44 = vpop.xlane.xlu1 %501  ;;  %v504_v47 = vpop.xlane.xlu0 %503 }
 0x1c3   :  { %1690 = vrsqrt.f32 %v502_v44 }
 0x1c4   :  { %v1683_v48 = vpop.eup %1682  ;;  %1692 = vrsqrt.f32 %v500_v42 }
 0x1c5   :  { %v579_v53 = vmin.f32 %v1683_v48, 1e+12 }
 0x1c6   :  { %v506_v49 = vpop.xlane.xlu1 %505  ;;  %v508_v50 = vpop.xlane.xlu0 %507 }
 0x1c7   :  { %v611_v2 = vmul.f32 %v579_v53, %v1976_v40  ;;  %1694 = vrsqrt.f32 %v506_v49 }
 0x1c8   :  { %v1685_v54 = vpop.eup %1684  ;;  %1696 = vrsqrt.f32 %v504_v47 }
 0x1c9   :  { %v580_v57 = vmin.f32 %v1685_v54, 1e+12  ;;  %v1687_v58 = vpop.eup %1686 }
 0x1ca   :  { %v510_v59 = vpop.xlane.xlu1 %509  ;;  %v512_v63 = vpop.xlane.xlu0 %511  ;;  %v582_v6 = vmin.f32 %v1687_v58, 1e+12 }
 0x1cb   :  { %v612_v3 = vmul.f32 %v580_v57, %v1986_v46  ;;  %v1689_v5 = vpop.eup %1688  ;;  %1698 = vrsqrt.f32 %v510_v59 }
 0x1cc   :  { %v581_v33 = vmin.f32 %v1689_v5, 1e+12  ;;  %v614_v15 = vmul.f32 %v582_v6, %v1981_v43  ;;  %1700 = vrsqrt.f32 %v508_v50 }
 0x1cd   :  { %v639_v30 = vpack.c.bf16 %v612_v3, %v611_v2 }
 0x1ce   :  { %v514_v11 = vpop.xlane.xlu1 %513  ;;  %v516_v12 = vpop.xlane.xlu0 %515  ;;  %v613_v40 = vmul.f32 %v581_v33, %v1973_v38 }
 0x1cf   :  { %820 = vmatmul.mubr.bf16.vlgmr.msra.gmra.mxu1 %v639_v30 }
 0x1d0   :  { %829 = vmatprep.mubr.bf16.mxu1 %v1884_v60  ;;  %v1691_v19 = vpop.eup %1690  ;;  %v640_v26 = vpack.c.bf16 %v614_v15, %v613_v40 }
 0x1d1   :  { %v1693_v46 = vpop.eup %1692  ;;  %v584_v23 = vmin.f32 %v1691_v19, 1e+12 }
 0x1d2   :  { %v518_v20 = vpop.xlane.xlu1 %517  ;;  %v2146_v22 = vpop.xlane.xlu0 %519  ;;  %v583_v37 = vmin.f32 %v1693_v46, 1e+12 }
 0x1d3   :  { %v616_v43 = vmul.f32 %v584_v23, %v2001_v56 }
 0x1d4   :  { %v1695_v41 = vpop.eup %1694  ;;  %v615_v38 = vmul.f32 %v583_v37, %v1996_v52 }
 0x1d5   :  { %v1697_v44 = vpop.eup %1696  ;;  %v586_v47 = vmin.f32 %v1695_v41, 1e+12 }
 0x1d6   :  { %v522_v34 = vpop.xlane.xlu1 %521  ;;  %v476_v27 = vpop.xlane.xlu0 %475  ;;  %v641_v48 = vpack.c.bf16 %v616_v43, %v615_v38  ;;  %v585_v53 = vmin.f32 %v1697_v44, 1e+12 }
 0x1d7   :  { %830 = vmatmul.mubr.bf16.gmra.mxu1 %v640_v26  ;;  %1702 = vrsqrt.f32 %v476_v27  ;;  %v618_v56 = vmul.f32 %v586_v47, %v2006_v61 }
 0x1d8   :  { %839 = vmatprep.mubr.bf16.mxu1 %v1884_v60  ;;  %v1699_v54 = vpop.eup %1698  ;;  %v617_v52 = vmul.f32 %v585_v53, %v1993_v51 }
 0x1d9   :  { %v1701_v59 = vpop.eup %1700  ;;  %v588_v3 = vmin.f32 %v1699_v54, 1e+12 }
 0x1da   :  { %v478_v36 = vpop.xlane.xlu1 %477  ;;  %v2151_v42 = vpop.xlane.xlu0 %523  ;;  %v642_v5 = vpack.c.bf16 %v618_v56, %v617_v52  ;;  %v587_v30 = vmin.f32 %v1701_v59, 1e+12 }
 0x1db   :  { %1704 = vrsqrt.f32 %v478_v36  ;;  %v620_v15 = vmul.f32 %v588_v3, %v2024_v9 }
 0x1dc   :  { %1706 = vrsqrt.f32 %v514_v11 }
 0x1dd   :  { %1708 = vrsqrt.f32 %v512_v63 }
 0x1de   :  { %v2154_v49 = vpop.xlane.xlu1 %525  ;;  %v480_v50 = vpop.xlane.xlu0 %479 }
 0x1df   :  { %840 = vmatmul.mubr.bf16.gmra.mxu1 %v641_v48  ;;  %1710 = vrsqrt.f32 %v480_v50 }
 0x1e0   :  { %849 = vmatprep.mubr.bf16.mxu1 %v1884_v60 }
 0x1e2   :  { %v482_v57 = vpop.xlane.xlu1 %481  ;;  %v2158_v58 = vpop.xlane.xlu0 %527 }
 0x1e3   :  { %1712 = vrsqrt.f32 %v482_v57 }
 0x1e4   :  { %v1703_v2 = vpop.eup %1702  ;;  %1714 = vrsqrt.f32 %v518_v20 }
 0x1e5   :  { %1716 = vrsqrt.f32 %v516_v12  ;;  %v571_v11 = vmin.f32 %v1703_v2, 1e+12  ;;  %v619_v12 = vmul.f32 %v587_v30, %v2014_v1 }
 0x1e6   :  { %v2161_v6 = vpop.xlane.xlu1 %529  ;;  %v484_v63 = vpop.xlane.xlu0 %483 }
 0x1e7   :  { %850 = vmatmul.mubr.bf16.gmra.mxu1 %v642_v5  ;;  %1718 = vrsqrt.f32 %v484_v63  ;;  %v603_v20 = vmul.f32 %v571_v11, %v2050_v39  ;;  %v643_v43 = vpack.c.bf16 %v620_v15, %v619_v12 }
 0x1e8   :  { %v1705_v61 = vpop.eup %1704  ;;  %859 = vmatprep.mubr.bf16.mxu1 %v1884_v60 }
 0x1e9   :  { %v572_v33 = vmin.f32 %v1705_v61, 1e+12  ;;  %v1707_v51 = vpop.eup %1706 }
 0x1ea   :  { %v486_v19 = vpop.xlane.xlu1 %485  ;;  %v2165_v40 = vpop.xlane.xlu0 %531  ;;  %v590_v27 = vmin.f32 %v1707_v51, 1e+12 }
 0x1eb   :  { %v604_v46 = vmul.f32 %v572_v33, %v2061_v29  ;;  %1720 = vrsqrt.f32 %v486_v19  ;;  %v1709_v23 = vpop.eup %1708 }
 0x1ec   :  { %v1711_v26 = vpop.eup %1710  ;;  %1722 = vrsqrt.f32 %v522_v34  ;;  %v589_v9 = vmin.f32 %v1709_v23, 1e+12  ;;  %v622_v29 = vmul.f32 %v590_v27, %v2021_v8 }
 0x1ed   :  { %v635_v37 = vpack.c.bf16 %v604_v46, %v603_v20  ;;  %1724 = vrsqrt.f32 %v2146_v22  ;;  %v573_v38 = vmin.f32 %v1711_v26, 1e+12 }
 0x1ee   :  { %v534_v41 = vpop.xlane.xlu1 %533  ;;  %v488_v36 = vpop.xlane.xlu0 %487  ;;  %v621_v22 = vmul.f32 %v589_v9, %v2011_v0 }
 0x1ef   :  { %780 = vmatmul.mubr.bf16.vlgmr.msra.gmra.mxu0 %v635_v37  ;;  %860 = vmatmul.mubr.bf16.gmra.mxu1 %v643_v43  ;;  %1726 = vrsqrt.f32 %v488_v36  ;;  %v605_v47 = vmul.f32 %v573_v38, %v2072_v31 }
 0x1f0   :  { %v1713_v39 = vpop.eup %1712  ;;  %869 = vmatprep.mubr.bf16.mxu1 %v1884_v60  ;;  %789 = vmatprep.mubr.bf16.mxu0 %v1884_v60  ;;  %v644_v57 = vpack.c.bf16 %v622_v29, %v621_v22 }
 0x1f1   :  { %v574_v1 = vmin.f32 %v1713_v39, 1e+12  ;;  %v1715_v34 = vpop.eup %1714 }
 0x1f2   :  { %v490_v44 = vpop.xlane.xlu1 %489  ;;  %v1717_v50 = vpop.eup %1716  ;;  %v592_v56 = vmin.f32 %v1715_v34, 1e+12 }
 0x1f3   :  { %1728 = vrsqrt.f32 %v490_v44  ;;  %v606_v48 = vmul.f32 %v574_v1, %v2085_v28  ;;  %v591_v52 = vmin.f32 %v1717_v50, 1e+12 }
 0x1f4   :  { %v1719_v53 = vpop.eup %1718  ;;  %1730 = vrsqrt.f32 %v2154_v49  ;;  %v624_v0 = vmul.f32 %v592_v56, %v2044_v25 }
 0x1f5   :  { %v636_v54 = vpack.c.bf16 %v606_v48, %v605_v47  ;;  %1732 = vrsqrt.f32 %v2151_v42  ;;  %v575_v8 = vmin.f32 %v1719_v53, 1e+12  ;;  %v623_v3 = vmul.f32 %v591_v52, %v2034_v17  ;;  %v1211_v52 = vld [vmem:[#allocation5 + $0x40] sm:$0xff] }
 0x1f6   :  { %1734 = vrsqrt.f32 %v2161_v6 }
 0x1f7   :  { %790 = vmatmul.mubr.bf16.gmra.mxu0 %v636_v54  ;;  %870 = vmatmul.mubr.bf16.gmra.mxu1 %v644_v57  ;;  %v607_v2 = vmul.f32 %v575_v8, %v2096_v7  ;;  %v645_v11 = vpack.c.bf16 %v624_v0, %v623_v3  ;;  %1736 = vrsqrt.f32 %v2158_v58  ;;  %v1212_v0 = vld [vmem:[#allocation5 + $0x48] sm:$0xff] }
 0x1f8   :  { %v1721_v59 = vpop.eup %1720  ;;  %799 = vmatprep.mubr.bf16.mxu0 %v1884_v60  ;;  %879 = vmatprep.mubr.bf16.mxu1 %v1884_v60  ;;  %1738 = vrsqrt.f32 %v534_v41 }
 0x1f9   :  { %v576_v31 = vmin.f32 %v1721_v59, 1e+12  ;;  %v1723_v28 = vpop.eup %1722  ;;  %1740 = vrsqrt.f32 %v2165_v40 }
 0x1fa   :  { %v1725_v5 = vpop.eup %1724  ;;  %v594_v63 = vmin.f32 %v1723_v28, 1e+12 }
 0x1fb   :  { %v608_v49 = vmul.f32 %v576_v31, %v2107_v13  ;;  %v593_v61 = vmin.f32 %v1725_v5, 1e+12 }
 0x1fc   :  { %v1727_v42 = vpop.eup %1726  ;;  %v626_v17 = vmul.f32 %v594_v63, %v2041_v24 }
 0x1fd   :  { %v637_v30 = vpack.c.bf16 %v608_v49, %v607_v2  ;;  %v577_v33 = vmin.f32 %v1727_v42, 1e+12  ;;  %v625_v51 = vmul.f32 %v593_v61, %v2031_v16  ;;  %v536_v16 = vpop.xlane.xlu0 %535 }
 0x1ff   :  { %800 = vmatmul.mubr.bf16.gmra.mxu0 %v637_v30  ;;  %880 = vmatmul.mubr.bf16.gmra.mxu1 %v645_v11  ;;  %v609_v15 = vmul.f32 %v577_v33, %v2118_v18  ;;  %v646_v46 = vpack.c.bf16 %v626_v17, %v625_v51  ;;  %v538_v18 = vpop.xlane.xlu1 %537  ;;  %v1213_v30 = vld [vmem:[#allocation5 + $0x50] sm:$0xff] }
 0x200   :  { %v1729_v25 = vpop.eup %1728  ;;  %809 = vmatprep.mubr.bf16.mxu0 %v1884_v60  ;;  %889 = vmatprep.mubr.bf16.mxu1 %v1884_v60  ;;  %1742 = vrsqrt.f32 %v538_v18 }
 0x201   :  { %v578_v7 = vmin.f32 %v1729_v25, 1e+12  ;;  %v1731_v13 = vpop.eup %1730  ;;  %1744 = vrsqrt.f32 %v536_v16 }
 0x202   :  { %v1733_v19 = vpop.eup %1732  ;;  %v596_v58 = vmin.f32 %v1731_v13, 1e+12  ;;  %v1214_v13 = vld [vmem:[#allocation5 + $0x58] sm:$0xff] }
 0x203   :  { %v610_v6 = vmul.f32 %v578_v7, %v2129_v21  ;;  %v595_v12 = vmin.f32 %v1733_v19, 1e+12  ;;  %v1735_v23 = vpop.eup %1734 }
 0x204   :  { %v628_v24 = vmul.f32 %v596_v58, %v2066_v55  ;;  %v1737_v26 = vpop.eup %1736  ;;  %v598_v27 = vmin.f32 %v1735_v23, 1e+12 }
 0x205   :  { %v638_v20 = vpack.c.bf16 %v610_v6, %v609_v15  ;;  %v627_v21 = vmul.f32 %v595_v12, %v2055_v45  ;;  %v597_v43 = vmin.f32 %v1737_v26, 1e+12  ;;  %v1739_v41 = vpop.eup %1738  ;;  %v1215_v12 = vld [vmem:[#allocation5 + $0x60] sm:$0xff] }
 0x206   :  { %v630_v40 = vmul.f32 %v598_v27, %v2090_v4  ;;  %v1741_v55 = vpop.eup %1740  ;;  %v600_v9 = vmin.f32 %v1739_v41, 1e+12  ;;  %v1216_v27 = vld [vmem:[#allocation5 + $0x68] sm:$0xff] }
 0x207   :  { %810 = vmatmul.mubr.bf16.gmra.mxu0 %v638_v20  ;;  %890 = vmatmul.mubr.bf16.gmra.mxu1 %v646_v46  ;;  %v647_v37 = vpack.c.bf16 %v628_v24, %v627_v21  ;;  %v629_v36 = vmul.f32 %v597_v43, %v2079_v62  ;;  %v599_v39 = vmin.f32 %v1741_v55, 1e+12 }
 0x208   :  { %899 = vmatprep.mubr.bf16.mxu1 %v1884_v60  ;;  %v632_v45 = vmul.f32 %v600_v9, %v2112_v14  ;;  %v2209_v14 = vld [vmem:[%s2260_s5] ss:$0 sm:$0xff]  ;;  %s1885_s5 = smov [#allocation10]  }
 0x209   :  { %v648_v38 = vpack.c.bf16 %v630_v40, %v629_v36  ;;  %v631_v29 = vmul.f32 %v599_v39, %v2101_v10  ;;  %s1304_s24 = sshll.u32 %s1885_s5, 4  ;;  %s1305_s24 = int_to_ptr.vmem [resolvable:$true] %s1304_s24 }
 0x20a   :  { %s1826_s25 = scalar_lea.vmem %s1305_s24, 2048  ;;  %p1831_p7 = scmp.lt.s32.totalorder %s1305_s24, %s1305_s24 }
 0x20b   :  { %v649_v47 = vpack.c.bf16 %v632_v45, %v631_v29  ;;  %p1827_p6 = scmp.ne.s32.totalorder %s1305_s24, %s1826_s25  ;;  %p1832_p8 = scmp.lt.s32.totalorder %s1826_s25, %s1826_s25 }
 0x20d   :  { %v1743_v1 = vpop.eup %1742  ;;  %p1833_p9 = por %p1832_p8, %p1831_p7 }
 0x20e   :  { %v1745_v34 = vpop.eup %1744  ;;  %v602_v44 = vmin.f32 %v1743_v1, 1e+12 }
 0x20f   :  { %900 = vmatmul.mubr.bf16.gmra.mxu1 %v647_v37  ;;  %v601_v48 = vmin.f32 %v1745_v34, 1e+12  ;;  %p1834_p10 = pnand %p1833_p9, %p1827_p6 }
 0x210   :  { %909 = vmatprep.mubr.bf16.mxu1 %v1884_v60  ;;  %v634_v62 = vmul.f32 %v602_v44, %v2134_v32 }
 0x211   :  { %v633_v4 = vmul.f32 %v601_v48, %v2123_v35  ;;  %v1218_v48 = vld [vmem:[#allocation5 + $0x78] sm:$0xff] }
 0x213   :  { %v650_v22 = vpack.c.bf16 %v634_v62, %v633_v4 }
 0x217   :  { %910 = vmatmul.mubr.bf16.gmra.mxu1 %v648_v38  ;;  %v1217_v38 = vld [vmem:[#allocation5 + $0x70] sm:$0xff] }
 0x218   :  { %919 = vmatprep.mubr.bf16.mxu1 %v1884_v60 }
 0x21f   :  { %920 = vmatmul.mubr.bf16.gmra.mxu1 %v649_v47 }
 0x220   :  { %929 = vmatprep.mubr.bf16.mxu1 %v1884_v60 }
 0x227   :  { %930 = vmatmul.mubr.bf16.gmra.mxu1 %v650_v22 }
 0x28f   :  { %v821_v50 = vpop.f32.mrf.mxu1 }
 0x291   :  { %v823_v10 = vpop.f32.mrf.mxu1 }
 0x292   :  { %v1115_v53 = vadd.f32 %v2209_v14, %v823_v10 }
 0x293   :  { %v825_v56 = vpop.f32.mrf.mxu1 }
 0x294   :  { %v1147_v54 = vmul.f32 0.01, %v1115_v53  ;;  %v1463_v57 = vpack.c.bf16 %v825_v56, %v821_v50 }
 0x295   :  { %v827_v60 = vpop.f32.mrf.mxu1 }
 0x296   :  { %v1179_v8 = vmax.f32 %v1115_v53, %v1147_v54  ;;  %1523 = vst [vmem:[#allocation10 + $0x20] sm:$0xff] %v1463_v57   ;;  %v1116_v35 = vadd.f32 %v2209_v14, %v827_v60 }
 0x297   :  { %v831_v32 = vpop.f32.mrf.mxu1 }
 0x298   :  { %v1243_v59 = vadd.f32 %v1211_v52, %v1179_v8  ;;  %v1148_v31 = vmul.f32 0.01, %v1116_v35  ;;  %v1203_v8 = vld [vmem:[#allocation5] sm:$0xff] }
 0x299   :  { %v833_v28 = vpop.f32.mrf.mxu1 }
 0x29a   :  { %1275 = vst [vmem:[#allocation11 + $0x40] sm:$0xff] %v1243_v59  ;;  %v1180_v2 = vmax.f32 %v1116_v35, %v1148_v31  ;;  %v1117_v49 = vadd.f32 %v2209_v14, %v833_v28  ;;  %v1219_v35 = vld [vmem:[#allocation5 + $0x80] sm:$0xff] }
 0x29b   :  { %v835_v3 = vpop.f32.mrf.mxu1 }
 0x29c   :  { %v1244_v5 = vadd.f32 %v1212_v0, %v1180_v2  ;;  %v1149_v42 = vmul.f32 0.01, %v1117_v49  ;;  %v1468_v63 = vpack.c.bf16 %v835_v3, %v831_v32 }
 0x29d   :  { %v837_v11 = vpop.f32.mrf.mxu1 }
 0x29e   :  { %1276 = vst [vmem:[#allocation11 + $0x48] sm:$0xff] %v1244_v5  ;;  %v1181_v61 = vmax.f32 %v1117_v49, %v1149_v42  ;;  %1524 = vst [vmem:[#allocation10 + $0x28] sm:$0xff] %v1468_v63   ;;  %v1118_v33 = vadd.f32 %v2209_v14, %v837_v11 }
 0x29f   :  { %v841_v25 = vpop.f32.mrf.mxu1 }
 0x2a0   :  { %v1245_v7 = vadd.f32 %v1213_v30, %v1181_v61  ;;  %v1150_v17 = vmul.f32 0.01, %v1118_v33  ;;  %v1204_v61 = vld [vmem:[#allocation5 + $0x8] sm:$0xff] }
 0x2a1   :  { %v843_v15 = vpop.f32.mrf.mxu1 }
 0x2a2   :  { %1277 = vst [vmem:[#allocation11 + $0x50] sm:$0xff] %v1245_v7  ;;  %v1182_v6 = vmax.f32 %v1118_v33, %v1150_v17  ;;  %v1119_v51 = vadd.f32 %v2209_v14, %v843_v15  ;;  %v1220_v33 = vld [vmem:[#allocation5 + $0x88] sm:$0xff] }
 0x2a3   :  { %v845_v19 = vpop.f32.mrf.mxu1 }
 0x2a4   :  { %v1246_v58 = vadd.f32 %v1214_v13, %v1182_v6  ;;  %v1151_v20 = vmul.f32 0.01, %v1119_v51  ;;  %v1473_v46 = vpack.c.bf16 %v845_v19, %v841_v25 }
 0x2a5   :  { %v847_v24 = vpop.f32.mrf.mxu1 }
 0x2a6   :  { %1278 = vst [vmem:[#allocation11 + $0x58] sm:$0xff] %v1246_v58  ;;  %v1183_v23 = vmax.f32 %v1119_v51, %v1151_v20  ;;  %1525 = vst [vmem:[#allocation10 + $0x30] sm:$0xff] %v1473_v46   ;;  %v1120_v18 = vadd.f32 %v2209_v14, %v847_v24  ;;  %v1205_v24 = vld [vmem:[#allocation5 + $0x10] sm:$0xff] }
 0x2a7   :  { %v851_v21 = vpop.f32.mrf.mxu1 }
 0x2a8   :  { %v1247_v26 = vadd.f32 %v1215_v12, %v1183_v23  ;;  %v1152_v16 = vmul.f32 0.01, %v1120_v18  ;;  %v1221_v23 = vld [vmem:[#allocation5 + $0x90] sm:$0xff] }
 0x2a9   :  { %v853_v37 = vpop.f32.mrf.mxu1 }
 0x2aa   :  { %1279 = vst [vmem:[#allocation11 + $0x60] sm:$0xff] %v1247_v26  ;;  %v1184_v43 = vmax.f32 %v1120_v18, %v1152_v16  ;;  %v1121_v40 = vadd.f32 %v2209_v14, %v853_v37 }
 0x2ab   :  { %v855_v41 = vpop.f32.mrf.mxu1 }
 0x2ac   :  { %v1248_v36 = vadd.f32 %v1216_v27, %v1184_v43  ;;  %v1153_v55 = vmul.f32 0.01, %v1121_v40  ;;  %v1478_v9 = vpack.c.bf16 %v855_v41, %v851_v21 }
 0x2ad   :  { %v857_v39 = vpop.f32.mrf.mxu1 }
 0x2ae   :  { %1280 = vst [vmem:[#allocation11 + $0x68] sm:$0xff] %v1248_v36  ;;  %v1185_v45 = vmax.f32 %v1121_v40, %v1153_v55  ;;  %1526 = vst [vmem:[#allocation10 + $0x38] sm:$0xff] %v1478_v9   ;;  %v1122_v1 = vadd.f32 %v2209_v14, %v857_v39 }
 0x2af   :  { %v781_v29 = vpop.f32.mrf.mxu0  ;;  %v861_v34 = vpop.f32.mrf.mxu1 }
 0x2b0   :  { %v1249_v44 = vadd.f32 %v1217_v38, %v1185_v45  ;;  %v1154_v47 = vmul.f32 0.01, %v1122_v1  ;;  %v1206_v45 = vld [vmem:[#allocation5 + $0x18] sm:$0xff] }
 0x2b1   :  { %v783_v62 = vpop.f32.mrf.mxu0  ;;  %v863_v4 = vpop.f32.mrf.mxu1 }
 0x2b2   :  { %1281 = vst [vmem:[#allocation11 + $0x70] sm:$0xff] %v1249_v44  ;;  %v1186_v22 = vmax.f32 %v1122_v1, %v1154_v47  ;;  %v1107_v50 = vadd.f32 %v2209_v14, %v783_v62  ;;  %v1123_v10 = vadd.f32 %v2209_v14, %v863_v4  ;;  %v1222_v1 = vld [vmem:[#allocation5 + $0x98] sm:$0xff] }
 0x2b3   :  { %v785_v53 = vpop.f32.mrf.mxu0  ;;  %v865_v56 = vpop.f32.mrf.mxu1 }
 0x2b4   :  { %v1250_v54 = vadd.f32 %v1218_v48, %v1186_v22  ;;  %v1139_v57 = vmul.f32 0.01, %v1107_v50  ;;  %v1155_v52 = vmul.f32 0.01, %v1123_v10  ;;  %v1443_v60 = vpack.c.bf16 %v785_v53, %v781_v29 }
 0x2b5   :  { %v1483_v32 = vpack.c.bf16 %v865_v56, %v861_v34  ;;  %v787_v59 = vpop.f32.mrf.mxu0  ;;  %v867_v31 = vpop.f32.mrf.mxu1 }
 0x2b6   :  { %1282 = vst [vmem:[#allocation11 + $0x78] sm:$0xff] %v1250_v54  ;;  %v1171_v0 = vmax.f32 %v1107_v50, %v1139_v57  ;;  %v1187_v28 = vmax.f32 %v1123_v10, %v1155_v52  ;;  %1444 = vst [vmem:[#allocation10] sm:$0xff] %v1443_v60   ;;  %v1108_v2 = vadd.f32 %v2209_v14, %v787_v59  ;;  %v1207_v54 = vld [vmem:[#allocation5 + $0x20] sm:$0xff] }
 0x2b7   :  { %v1124_v49 = vadd.f32 %v2209_v14, %v867_v31  ;;  %1527 = vst [vmem:[#allocation10 + $0x40] sm:$0xff] %v1483_v32   ;;  %v791_v3 = vpop.f32.mrf.mxu0  ;;  %v871_v5 = vpop.f32.mrf.mxu1  ;;  %v1223_v57 = vld [vmem:[#allocation5 + $0xa0] sm:$0xff] }
 0x2b8   :  { %v1235_v42 = vadd.f32 %v1203_v8, %v1171_v0  ;;  %v1251_v63 = vadd.f32 %v1219_v35, %v1187_v28  ;;  %v1140_v30 = vmul.f32 0.01, %v1108_v2 }
 0x2b9   :  { %v1156_v11 = vmul.f32 0.01, %v1124_v49  ;;  %v793_v25 = vpop.f32.mrf.mxu0  ;;  %v873_v7 = vpop.f32.mrf.mxu1 }
 0x2ba   :  { %1267 = vst [vmem:[#allocation11] sm:$0xff] %v1235_v42  ;;  %1283 = vst [vmem:[#allocation11 + $0x80] sm:$0xff] %v1251_v63  ;;  %v1172_v17 = vmax.f32 %v1108_v2, %v1140_v30  ;;  %v1109_v15 = vadd.f32 %v2209_v14, %v793_v25  ;;  %v1125_v6 = vadd.f32 %v2209_v14, %v873_v7  ;;  %v1208_v63 = vld [vmem:[#allocation5 + $0x28] sm:$0xff] }
 0x2bb   :  { %v1188_v13 = vmax.f32 %v1124_v49, %v1156_v11  ;;  %v795_v51 = vpop.f32.mrf.mxu0  ;;  %v875_v19 = vpop.f32.mrf.mxu1  ;;  %v1224_v30 = vld [vmem:[#allocation5 + $0xa8] sm:$0xff] }
 0x2bc   :  { %v1236_v58 = vadd.f32 %v1204_v61, %v1172_v17  ;;  %v1141_v46 = vmul.f32 0.01, %v1109_v15  ;;  %v1157_v12 = vmul.f32 0.01, %v1125_v6  ;;  %v1448_v18 = vpack.c.bf16 %v795_v51, %v791_v3 }
 0x2bd   :  { %v1252_v20 = vadd.f32 %v1220_v33, %v1188_v13  ;;  %v1488_v21 = vpack.c.bf16 %v875_v19, %v871_v5  ;;  %v797_v26 = vpop.f32.mrf.mxu0  ;;  %v877_v16 = vpop.f32.mrf.mxu1 }
 0x2be   :  { %1268 = vst [vmem:[#allocation11 + $0x8] sm:$0xff] %v1236_v58  ;;  %v1173_v27 = vmax.f32 %v1109_v15, %v1141_v46  ;;  %v1189_v37 = vmax.f32 %v1125_v6, %v1157_v12  ;;  %v1110_v43 = vadd.f32 %v2209_v14, %v797_v26  ;;  %v1126_v40 = vadd.f32 %v2209_v14, %v877_v16  ;;  %v1225_v46 = vld [vmem:[#allocation5 + $0xb0] sm:$0xff] }
 0x2bf   :  { %1284 = vst [vmem:[#allocation11 + $0x88] sm:$0xff] %v1252_v20  ;;  %1520 = vst [vmem:[#allocation10 + $0x8] sm:$0xff] %v1448_v18   ;;  %v801_v41 = vpop.f32.mrf.mxu0  ;;  %v881_v36 = vpop.f32.mrf.mxu1  ;;  %v1209_v20 = vld [vmem:[#allocation5 + $0x30] sm:$0xff] }
 0x2c0   :  { %1528 = vst [vmem:[#allocation10 + $0x48] sm:$0xff] %v1488_v21   ;;  %v1237_v55 = vadd.f32 %v1205_v24, %v1173_v27  ;;  %v1253_v9 = vadd.f32 %v1221_v23, %v1189_v37  ;;  %v1142_v38 = vmul.f32 0.01, %v1110_v43  ;;  %v1158_v39 = vmul.f32 0.01, %v1126_v40 }
 0x2c1   :  { %v803_v29 = vpop.f32.mrf.mxu0  ;;  %v883_v34 = vpop.f32.mrf.mxu1 }
 0x2c2   :  { %1269 = vst [vmem:[#allocation11 + $0x10] sm:$0xff] %v1237_v55  ;;  %1285 = vst [vmem:[#allocation11 + $0x90] sm:$0xff] %v1253_v9  ;;  %v1174_v44 = vmax.f32 %v1110_v43, %v1142_v38  ;;  %v1190_v47 = vmax.f32 %v1126_v40, %v1158_v39  ;;  %v1111_v48 = vadd.f32 %v2209_v14, %v803_v29  ;;  %v1210_v55 = vld [vmem:[#allocation5 + $0x38] sm:$0xff] }
 0x2c3   :  { %v1127_v62 = vadd.f32 %v2209_v14, %v883_v34  ;;  %v805_v4 = vpop.f32.mrf.mxu0  ;;  %v885_v22 = vpop.f32.mrf.mxu1  ;;  %v1226_v9 = vld [vmem:[#allocation5 + $0xb8] sm:$0xff] }
 0x2c4   :  { %v1238_v50 = vadd.f32 %v1206_v45, %v1174_v44  ;;  %v1254_v10 = vadd.f32 %v1222_v1, %v1190_v47  ;;  %v1143_v53 = vmul.f32 0.01, %v1111_v48  ;;  %v1453_v52 = vpack.c.bf16 %v805_v4, %v801_v41 }
 0x2c5   :  { %v1159_v56 = vmul.f32 0.01, %v1127_v62  ;;  %v1493_v60 = vpack.c.bf16 %v885_v22, %v881_v36  ;;  %v807_v8 = vpop.f32.mrf.mxu0  ;;  %v887_v35 = vpop.f32.mrf.mxu1 }
 0x2c6   :  { %1270 = vst [vmem:[#allocation11 + $0x18] sm:$0xff] %v1238_v50  ;;  %1286 = vst [vmem:[#allocation11 + $0x98] sm:$0xff] %v1254_v10  ;;  %v1175_v32 = vmax.f32 %v1111_v48, %v1143_v53  ;;  %v1112_v31 = vadd.f32 %v2209_v14, %v807_v8  ;;  %v1128_v0 = vadd.f32 %v2209_v14, %v887_v35 }
 0x2c7   :  { %v1191_v59 = vmax.f32 %v1127_v62, %v1159_v56  ;;  %1521 = vst [vmem:[#allocation10 + $0x10] sm:$0xff] %v1453_v52   ;;  %1529 = vst [vmem:[#allocation10 + $0x50] sm:$0xff] %v1493_v60   ;;  %v811_v28 = vpop.f32.mrf.mxu0  ;;  %v891_v2 = vpop.f32.mrf.mxu1  ;;  %v1227_v62 = vld [vmem:[#allocation5 + $0xc0] sm:$0xff] }
 0x2c8   :  { %v1239_v49 = vadd.f32 %v1207_v54, %v1175_v32  ;;  %v1144_v5 = vmul.f32 0.01, %v1112_v31  ;;  %v1160_v42 = vmul.f32 0.01, %v1128_v0  ;;  %v1228_v54 = vld [vmem:[#allocation5 + $0xc8] sm:$0xff] }
 0x2c9   :  { %v1255_v3 = vadd.f32 %v1223_v57, %v1191_v59  ;;  %v813_v11 = vpop.f32.mrf.mxu0  ;;  %v893_v61 = vpop.f32.mrf.mxu1 }
 0x2ca   :  { %1271 = vst [vmem:[#allocation11 + $0x20] sm:$0xff] %v1239_v49  ;;  %v1176_v33 = vmax.f32 %v1112_v31, %v1144_v5  ;;  %v1192_v25 = vmax.f32 %v1128_v0, %v1160_v42  ;;  %v1113_v7 = vadd.f32 %v2209_v14, %v813_v11  ;;  %v1129_v17 = vadd.f32 %v2209_v14, %v893_v61  ;;  %v1229_v31 = vld [vmem:[#allocation5 + $0xd0] sm:$0xff]  ;;  %v1230_v42 = vld [vmem:[#allocation5 + $0xd8] sm:$0xff] }
 0x2cb   :  { %1287 = vst [vmem:[#allocation11 + $0xa0] sm:$0xff] %v1255_v3  ;;  %v815_v13 = vpop.f32.mrf.mxu0  ;;  %v895_v15 = vpop.f32.mrf.mxu1 }
 0x2cc   :  { %v1240_v6 = vadd.f32 %v1208_v63, %v1176_v33  ;;  %v1256_v51 = vadd.f32 %v1224_v30, %v1192_v25  ;;  %v1145_v19 = vmul.f32 0.01, %v1113_v7  ;;  %v1161_v58 = vmul.f32 0.01, %v1129_v17 }
 0x2cd   :  { %v1458_v12 = vpack.c.bf16 %v815_v13, %v811_v28  ;;  %v1498_v24 = vpack.c.bf16 %v895_v15, %v891_v2  ;;  %v817_v23 = vpop.f32.mrf.mxu0  ;;  %v897_v18 = vpop.f32.mrf.mxu1 }
 0x2ce   :  { %1272 = vst [vmem:[#allocation11 + $0x28] sm:$0xff] %v1240_v6  ;;  %1288 = vst [vmem:[#allocation11 + $0xa8] sm:$0xff] %v1256_v51  ;;  %v1177_v21 = vmax.f32 %v1113_v7, %v1145_v19  ;;  %v1193_v26 = vmax.f32 %v1129_v17, %v1161_v58  ;;  %v1114_v16 = vadd.f32 %v2209_v14, %v817_v23  ;;  %v1231_v17 = vld [vmem:[#allocation5 + $0xe0] sm:$0xff] }
 0x2cf   :  { %v1130_v27 = vadd.f32 %v2209_v14, %v897_v18  ;;  %1522 = vst [vmem:[#allocation10 + $0x18] sm:$0xff] %v1458_v12   ;;  %1530 = vst [vmem:[#allocation10 + $0x58] sm:$0xff] %v1498_v24   ;;  %v901_v37 = vpop.f32.mrf.mxu1 }
 0x2d0   :  { %v1241_v43 = vadd.f32 %v1209_v20, %v1177_v21  ;;  %v1257_v40 = vadd.f32 %v1225_v46, %v1193_v26  ;;  %v1146_v41 = vmul.f32 0.01, %v1114_v16  ;;  %v1232_v20 = vld [vmem:[#allocation5 + $0xe8] sm:$0xff] }
 0x2d1   :  { %v1162_v36 = vmul.f32 0.01, %v1130_v27  ;;  %v903_v38 = vpop.f32.mrf.mxu1 }
 0x2d2   :  { %1273 = vst [vmem:[#allocation11 + $0x30] sm:$0xff] %v1241_v43  ;;  %1289 = vst [vmem:[#allocation11 + $0xb0] sm:$0xff] %v1257_v40  ;;  %v1178_v39 = vmax.f32 %v1114_v16, %v1146_v41  ;;  %v1131_v1 = vadd.f32 %v2209_v14, %v903_v38  ;;  %v1233_v16 = vld [vmem:[#allocation5 + $0xf0] sm:$0xff] }
 0x2d3   :  { %v1194_v45 = vmax.f32 %v1130_v27, %v1162_v36  ;;  %v905_v29 = vpop.f32.mrf.mxu1 }
 0x2d4   :  { %v1242_v34 = vadd.f32 %v1210_v55, %v1178_v39  ;;  %v1163_v47 = vmul.f32 0.01, %v1131_v1  ;;  %v1503_v48 = vpack.c.bf16 %v905_v29, %v901_v37 }
 0x2d5   :  { %v1258_v44 = vadd.f32 %v1226_v9, %v1194_v45  ;;  %v907_v4 = vpop.f32.mrf.mxu1 }
 0x2d6   :  { %1274 = vst [vmem:[#allocation11 + $0x38] sm:$0xff] %v1242_v34  ;;  %v1195_v22 = vmax.f32 %v1131_v1, %v1163_v47  ;;  %1531 = vst [vmem:[#allocation10 + $0x60] sm:$0xff] %v1503_v48   ;;  %v1132_v50 = vadd.f32 %v2209_v14, %v907_v4 }
 0x2d7   :  { %1290 = vst [vmem:[#allocation11 + $0xb8] sm:$0xff] %v1258_v44  ;;  %v911_v10 = vpop.f32.mrf.mxu1 }
 0x2d8   :  { %v1259_v53 = vadd.f32 %v1227_v62, %v1195_v22  ;;  %v1164_v56 = vmul.f32 0.01, %v1132_v50 }
 0x2d9   :  { %v913_v57 = vpop.f32.mrf.mxu1 }
 0x2da   :  { %1291 = vst [vmem:[#allocation11 + $0xc0] sm:$0xff] %v1259_v53  ;;  %v1196_v52 = vmax.f32 %v1132_v50, %v1164_v56  ;;  %v1133_v60 = vadd.f32 %v2209_v14, %v913_v57 }
 0x2db   :  { %v915_v8 = vpop.f32.mrf.mxu1 }
 0x2dc   :  { %v1260_v35 = vadd.f32 %v1228_v54, %v1196_v52  ;;  %v1165_v32 = vmul.f32 0.01, %v1133_v60  ;;  %v1508_v59 = vpack.c.bf16 %v915_v8, %v911_v10 }
 0x2dd   :  { %v917_v0 = vpop.f32.mrf.mxu1 }
 0x2de   :  { %1292 = vst [vmem:[#allocation11 + $0xc8] sm:$0xff] %v1260_v35  ;;  %v1197_v28 = vmax.f32 %v1133_v60, %v1165_v32  ;;  %1532 = vst [vmem:[#allocation10 + $0x68] sm:$0xff] %v1508_v59   ;;  %v1134_v2 = vadd.f32 %v2209_v14, %v917_v0 }
 0x2df   :  { %v921_v49 = vpop.f32.mrf.mxu1 }
 0x2e0   :  { %v1261_v3 = vadd.f32 %v1229_v31, %v1197_v28  ;;  %v1166_v5 = vmul.f32 0.01, %v1134_v2 }
 0x2e1   :  { %v923_v63 = vpop.f32.mrf.mxu1 }
 0x2e2   :  { %1293 = vst [vmem:[#allocation11 + $0xd0] sm:$0xff] %v1261_v3  ;;  %v1198_v30 = vmax.f32 %v1134_v2, %v1166_v5  ;;  %v1135_v11 = vadd.f32 %v2209_v14, %v923_v63 }
 0x2e3   :  { %v925_v61 = vpop.f32.mrf.mxu1 }
 0x2e4   :  { %v1262_v33 = vadd.f32 %v1230_v42, %v1198_v30  ;;  %v1167_v25 = vmul.f32 0.01, %v1135_v11  ;;  %v1513_v7 = vpack.c.bf16 %v925_v61, %v921_v49 }
 0x2e5   :  { %v927_v13 = vpop.f32.mrf.mxu1 }
 0x2e6   :  { %1294 = vst [vmem:[#allocation11 + $0xd8] sm:$0xff] %v1262_v33  ;;  %v1199_v15 = vmax.f32 %v1135_v11, %v1167_v25  ;;  %1533 = vst [vmem:[#allocation10 + $0x70] sm:$0xff] %v1513_v7   ;;  %v1136_v6 = vadd.f32 %v2209_v14, %v927_v13 }
 0x2e7   :  { %v931_v51 = vpop.f32.mrf.mxu1 }
 0x2e8   :  { %v1263_v19 = vadd.f32 %v1231_v17, %v1199_v15  ;;  %v1168_v58 = vmul.f32 0.01, %v1136_v6 }
 0x2e9   :  { %v933_v46 = vpop.f32.mrf.mxu1 }
 0x2ea   :  { %1295 = vst [vmem:[#allocation11 + $0xe0] sm:$0xff] %v1263_v19  ;;  %v1200_v12 = vmax.f32 %v1136_v6, %v1168_v58  ;;  %v1137_v24 = vadd.f32 %v2209_v14, %v933_v46 }
 0x2eb   :  { %v935_v23 = vpop.f32.mrf.mxu1 }
 0x2ec   :  { %v1264_v18 = vadd.f32 %v1232_v20, %v1200_v12  ;;  %v1169_v21 = vmul.f32 0.01, %v1137_v24  ;;  %v1518_v26 = vpack.c.bf16 %v935_v23, %v931_v51 }
 0x2ed   :  { %v937_v27 = vpop.f32.mrf.mxu1 }
 0x2ee   :  { %1296 = vst [vmem:[#allocation11 + $0xe8] sm:$0xff] %v1264_v18  ;;  %v1201_v37 = vmax.f32 %v1137_v24, %v1169_v21  ;;  %1534 = vst [vmem:[#allocation10 + $0x78] sm:$0xff] %v1518_v26   ;;  %v1138_v43 = vadd.f32 %v2209_v14, %v937_v27 }
 0x2ef   :  { %1837 = shalt.err (!%p1834_p10)
}
 0x2f0   :  { %1310 = dma.vmem_to_hbm [thread:$0]  %s1305_s24, 2048, %s2261_s6, [#allocation4], %s1880_s11, %s1880_s11, %s1881_s12   ;;  %v1265_v40 = vadd.f32 %v1233_v16, %v1201_v37  ;;  %v1170_v41 = vmul.f32 0.01, %v1138_v43  ;;  %v1234_v36 = vld [vmem:[#allocation5 + $0xf8] sm:$0xff] }
 0x2f1   :  { %s1886_s30 = smov [#allocation11]  }
 0x2f2   :  { %s1316_s8 = sshll.u32 %s1886_s30, 4  ;;  %1297 = vst [vmem:[#allocation11 + $0xf0] sm:$0xff] %v1265_v40  ;;  %v1202_v14 = vmax.f32 %v1138_v43, %v1170_v41  ;;  %s1317_s8 = int_to_ptr.vmem [resolvable:$true] %s1316_s8 }
 0x2f3   :  { %s1846_s9 = scalar_lea.vmem %s1317_s8, 4096  ;;  %p1851_p12 = scmp.lt.s32.totalorder %s1317_s8, %s1317_s8 }
 0x2f4   :  { %v1266_v55 = vadd.f32 %v1234_v36, %v1202_v14  ;;  %p1847_p11 = scmp.ne.s32.totalorder %s1317_s8, %s1846_s9  ;;  %p1852_p13 = scmp.lt.s32.totalorder %s1846_s9, %s1846_s9 }
 0x2f6   :  { %1298 = vst [vmem:[#allocation11 + $0xf8] sm:$0xff] %v1266_v55  ;;  %p1853_p0 = por %p1852_p13, %p1851_p12 }
 0x2f8   :  { %p1854_p1 = pnand %p1853_p0, %p1847_p11 }
 0x2fa   :  { %1857 = shalt.err (!%p1854_p1)
}
 0x2fb   :  { %1322 = dma.vmem_to_hbm [thread:$0]  %s1317_s8, 4096, %s2262_s7, [#allocation12], %s1877_s27, %s1877_s27, %s1878_s28  }
 0x2fc   :  { %1872 = dma.done.wait [#allocation4], 2048  }
 0x2fd   :  { %1873 = vsyncadd [#allocation4], 4294965248 }
 0x2fe   :  { %1874 = dma.done.wait [#allocation12], 4096  }
 0x2ff   :  { %1875 = vsyncadd [#allocation12], 4294963200 }
 0x300   :  { %1329 = vsyncpa [#allocation3], 1 }
 0x301   :  { %1330 = vsyncpa [#allocation6], 1 }
 0x302   :  { %1331 = vsyncpa [#allocation9], 1 }
 0x303   :  { %1332 = vsyncpa [#allocation4], 1 }
 0x304   :  { %1333 = vsyncpa [#allocation12], 1 }

</bundles_post_ra>
